<compile_context>
chip_gen: v7x
topology: tpu7x:2x2x1
jax: 0.10.0
libtpu: 0.0.40
codegen_flags: <defaults>
</compile_context>

<pallas_src>
import functools
import math

import jax
import jax.numpy as jnp
from jax.experimental import pallas as pl
from jax.experimental.pallas import tpu as pltpu


# ----------------------------------------------------------------------------
# helpers
# ----------------------------------------------------------------------------
def _round_up(x, m):
    return ((x + m - 1) // m) * m


def _layernorm(v, g, b, eps=1e-5):
    mu = jnp.mean(v, axis=-1, keepdims=True)
    var = jnp.mean((v - mu) ** 2, axis=-1, keepdims=True)
    return (v - mu) * jax.lax.rsqrt(var + eps) * g + b


# ----------------------------------------------------------------------------
# Fused kernel: grid = (batch_tiles, num_layers)
#   each step applies one ResidualAttentionBlock (causal MHA + QuickGELU MLP)
#   to a (Bt, Sp, D) batch tile kept resident in VMEM; the last layer also
#   applies ln_final + text_projection and writes the (Bt, Sp, P) output.
# ----------------------------------------------------------------------------
def fused_text_kernel(x_ref,
                      ln1_g, ln1_b, wqkv, bqkv, wo, bo,
                      ln2_g, ln2_b, w1, b1, w2, b2,
                      lnf_g, lnf_b, proj,
                      x1_ref,
                      x_scr,
                      *, num_heads):
    layer = pl.program_id(1)
    n_layers = pl.num_programs(1)

    @pl.when(layer == 0)
    def _():
        x_scr[...] = x_ref[...]

    Bt, Sp, D = x_scr.shape
    dh = D // num_heads
    scale = 1.0 / math.sqrt(dh)
    bf16 = jnp.bfloat16

    x2d = x_scr[...].reshape(Bt * Sp, D)          # f32 residual stream

    # ---------------- multi-head causal self-attention ----------------
    h = _layernorm(x2d, ln1_g[...], ln1_b[...])
    qkv = jnp.dot(h.astype(bf16), wqkv[...],
                  preferred_element_type=jnp.float32) + bqkv[...]
    qkv = qkv.reshape(Bt, Sp, 3 * D)

    row = jax.lax.broadcasted_iota(jnp.int32, (Sp, Sp), 0)
    col = jax.lax.broadcasted_iota(jnp.int32, (Sp, Sp), 1)
    causal_bias = jnp.where(col > row, -1e30, 0.0).astype(jnp.float32)

    head_outs = []
    for hi in range(num_heads):                    # static unroll over heads
        q = qkv[:, :, hi * dh:(hi + 1) * dh].astype(bf16)
        k = qkv[:, :, D + hi * dh:D + (hi + 1) * dh].astype(bf16)
        v = qkv[:, :, 2 * D + hi * dh:2 * D + (hi + 1) * dh].astype(bf16)
        s = jnp.einsum("bqd,bkd->bqk", q, k,
                       preferred_element_type=jnp.float32) * scale
        s = s + causal_bias[None]
        m = jnp.max(s, axis=-1, keepdims=True)
        p = jnp.exp(s - m)
        denom = jnp.sum(p, axis=-1, keepdims=True)
        p = p * pl.reciprocal(denom, approx=True)
        o = jnp.einsum("bqk,bkd->bqd", p.astype(bf16), v,
                       preferred_element_type=jnp.float32)     # (Bt, Sp, dh)
        head_outs.append(o.reshape(Bt * Sp, dh).astype(bf16))
    # lane-concat heads -> single full-K output projection on the MXU
    attn = jnp.concatenate(head_outs, axis=-1)                  # (Bt*Sp, D) bf16
    x2d = x2d + jnp.dot(attn, wo[...],
                        preferred_element_type=jnp.float32) + bo[...]

    # ---------------- MLP with QuickGELU ----------------
    h = _layernorm(x2d, ln2_g[...], ln2_b[...])
    h = jnp.dot(h.astype(bf16), w1[...],
                preferred_element_type=jnp.float32) + b1[...]
    h = h * jax.nn.sigmoid(1.702 * h)              # QuickGELU
    h = jnp.dot(h.astype(bf16), w2[...],
                preferred_element_type=jnp.float32) + b2[...]
    x2d = x2d + h

    x_scr[...] = x2d.reshape(Bt, Sp, D)

    # ---------------- fused ln_final + text_projection ----------------
    @pl.when(layer == n_layers - 1)
    def _():
        y = _layernorm(x2d, lnf_g[...], lnf_b[...])
        P = proj.shape[-1]
        x1_ref[...] = jnp.dot(y.astype(bf16), proj[...],
                              preferred_element_type=jnp.float32
                              ).reshape(Bt, Sp, P).astype(x1_ref.dtype)


# ----------------------------------------------------------------------------
# BlockSpec helpers
# ----------------------------------------------------------------------------
def _stacked_spec(shape):
    """Weight stacked on a leading layer axis: squeeze it, full tile otherwise."""
    n_rest = len(shape) - 1
    return pl.BlockSpec((None,) + tuple(shape[1:]),
                        lambda b, l, _n=n_rest: (l,) + (0,) * _n)


def _const_spec(shape):
    """Weight constant across the whole grid (ln_final / projection)."""
    n = len(shape)
    return pl.BlockSpec(tuple(shape), lambda b, l, _n=n: (0,) * _n)


# ----------------------------------------------------------------------------
# Wrappers
# ----------------------------------------------------------------------------
def run_text_transformer(x, stacked, lnf_g, lnf_b, proj, num_heads, block_b=8):
    B, Sp, D = x.shape
    L = stacked["wqkv"].shape[0]
    P = proj.shape[-1]
    assert D % num_heads == 0

    Bt = max(1, min(block_b, B))
    Bp = _round_up(B, Bt)
    if Bp != B:
        x = jnp.pad(x, ((0, Bp - B), (0, 0), (0, 0)))
    nb = Bp // Bt

    # pre-cast MXU weights to bf16 once in the wrapper: halves weight DMA
    # traffic per layer step and removes per-step casts inside the kernel.
    bf16_keys = ("wqkv", "wo", "w1", "w2")
    weight_order = ("ln1_g", "ln1_b", "wqkv", "bqkv", "wo", "bo",
                    "ln2_g", "ln2_b", "w1", "b1", "w2", "b2")
    weights = [stacked[k].astype(jnp.bfloat16) if k in bf16_keys else stacked[k]
               for k in weight_order]
    proj_b = proj.astype(jnp.bfloat16)

    in_specs = ([pl.BlockSpec((Bt, Sp, D), lambda b, l: (b, 0, 0))]
                + [_stacked_spec(w.shape) for w in weights]
                + [_const_spec(lnf_g.shape), _const_spec(lnf_b.shape),
                   _const_spec(proj_b.shape)])

    x1 = pl.pallas_call(
        functools.partial(fused_text_kernel, num_heads=num_heads),
        out_shape=jax.ShapeDtypeStruct((Bp, Sp, P), jnp.float32),
        grid=(nb, L),
        in_specs=in_specs,
        out_specs=pl.BlockSpec((Bt, Sp, P), lambda b, l: (b, 0, 0)),
        scratch_shapes=[pltpu.VMEM((Bt, Sp, D), jnp.float32)],
        compiler_params=pltpu.CompilerParams(
            dimension_semantics=("parallel", "arbitrary")),
    )(x, *weights, lnf_g, lnf_b, proj_b)
    return x1[:B]


def text_encoder_forward(params, text_ids, num_heads, block_b=8):
    """Returns (x_pooled, x1) matching TextEncoder.forward semantics."""
    # token embedding gather + positional embedding (glue, plain JAX)
    x = jnp.take(params["tok_emb"], text_ids, axis=0) + params["pos_emb"][None]
    B, S, D = x.shape
    # pad the sequence to a sublane multiple of 8; zero-padded rows cannot
    # influence valid rows under the causal mask.
    Sp = _round_up(S, 8)
    if Sp != S:
        x = jnp.pad(x, ((0, 0), (0, Sp - S), (0, 0)))

    stacked = {k: jnp.stack([lp[k] for lp in params["layers"]])
               for k in params["layers"][0]}
    x1 = run_text_transformer(x, stacked, params["lnf_g"], params["lnf_b"],
                              params["proj"], num_heads, block_b)[:, :S]

    # EOT-token pooling: x[arange(B), text.argmax(-1)] @ proj.  The projection
    # is linear, so pooling from x1 is mathematically identical.
    eot = jnp.argmax(text_ids, axis=-1)
    x_pooled = x1[jnp.arange(B), eot]
    return x_pooled, x1


# ----------------------------------------------------------------------------
# Pure-JAX f32 reference (correctness check)
# ----------------------------------------------------------------------------
def _ref_ln(v, g, b, eps=1e-5):
    mu = jnp.mean(v, axis=-1, keepdims=True)
    var = jnp.mean((v - mu) ** 2, axis=-1, keepdims=True)
    return (v - mu) / jnp.sqrt(var + eps) * g + b


def ref_forward(params, text_ids, num_heads):
    x = jnp.take(params["tok_emb"], text_ids, axis=0) + params["pos_emb"][None]
    B, S, D = x.shape
    dh = D // num_heads
    causal = jnp.triu(jnp.ones((S, S), bool), 1)
    for p in params["layers"]:
        h = _ref_ln(x, p["ln1_g"], p["ln1_b"])
        qkv = h @ p["wqkv"] + p["bqkv"]
        q, k, v = qkv[..., :D], qkv[..., D:2 * D], qkv[..., 2 * D:]
        q = q.reshape(B, S, num_heads, dh).transpose(0, 2, 1, 3)
        k = k.reshape(B, S, num_heads, dh).transpose(0, 2, 1, 3)
        v = v.reshape(B, S, num_heads, dh).transpose(0, 2, 1, 3)
        s = jnp.einsum("bhqd,bhkd->bhqk", q, k) / math.sqrt(dh)
        s = jnp.where(causal[None, None], -jnp.inf, s)
        a = jax.nn.softmax(s, axis=-1)
        o = jnp.einsum("bhqk,bhkd->bhqd", a, v).transpose(0, 2, 1, 3).reshape(B, S, D)
        x = x + (o @ p["wo"] + p["bo"])
        h = _ref_ln(x, p["ln2_g"], p["ln2_b"])
        h = h @ p["w1"] + p["b1"]
        h = h * jax.nn.sigmoid(1.702 * h)
        x = x + (h @ p["w2"] + p["b2"])
    y = _ref_ln(x, params["lnf_g"], params["lnf_b"])
    x1 = y @ params["proj"]
    eot = jnp.argmax(text_ids, axis=-1)
    return y[jnp.arange(B), eot] @ params["proj"], x1


# ----------------------------------------------------------------------------
# Deterministic synthetic parameters
# ----------------------------------------------------------------------------
def make_params(key, vocab, seq, dim, hidden, n_layers, out_dim):
    keys = iter(jax.random.split(key, 8 + 12 * n_layers))
    nxt = lambda s: 0.02 * jax.random.normal(next(keys), s, jnp.float32)
    params = {
        "tok_emb": nxt((vocab, dim)),
        "pos_emb": nxt((seq, dim)),
        "lnf_g": jnp.ones((1, dim), jnp.float32),
        "lnf_b": jnp.zeros((1, dim), jnp.float32),
        "proj": nxt((dim, out_dim)),
        "layers": [],
    }
    for _ in range(n_layers):
        params["layers"].append({
            "ln1_g": jnp.ones((1, dim), jnp.float32),
            "ln1_b": jnp.zeros((1, dim), jnp.float32),
            "wqkv": nxt((dim, 3 * dim)),
            "bqkv": nxt((1, 3 * dim)),
            "wo": nxt((dim, dim)),
            "bo": nxt((1, dim)),
            "ln2_g": jnp.ones((1, dim), jnp.float32),
            "ln2_b": jnp.zeros((1, dim), jnp.float32),
            "w1": nxt((dim, hidden)),
            "b1": nxt((1, hidden)),
            "w2": nxt((hidden, dim)),
            "b2": nxt((1, dim)),
        })
    return params


if __name__ == "__main__":
    B, S, D, H, L, V, P = 2, 8, 32, 4, 2, 64, 16

    key = jax.random.PRNGKey(0)
    k_par, k_txt = jax.random.split(key)
    params = make_params(k_par, V, S, D, 4 * D, L, P)
    # text['input_ids'] equivalent: integer token ids of shape (B, S)
    text_ids = jax.random.randint(k_txt, (B, S), 0, V, dtype=jnp.int32)

    x_pooled, x1 = text_encoder_forward(params, text_ids, H)
    jax.block_until_ready((x_pooled, x1))

    x_ref_pooled, x1_ref = ref_forward(params, text_ids, H)
    assert x_pooled.shape == (B, P) and x1.shape == (B, S, P)
    # bf16 MXU inputs + approx reciprocal -> loosened tolerance vs f32 reference
    assert jnp.allclose(x_pooled, x_ref_pooled, rtol=2e-2, atol=1e-2), \
        float(jnp.max(jnp.abs(x_pooled - x_ref_pooled)))
    assert jnp.allclose(x1, x1_ref, rtol=2e-2, atol=1e-2), \
        float(jnp.max(jnp.abs(x1 - x1_ref)))

    print("KERNEL_OK")
</pallas_src>

<mosaic_0001>
module attributes {stable_mosaic.version = 11 : i64} {
  func.func @fused_text_kernel(%arg0: i32, %arg1: i32, %arg2: memref<2x8x32xf32, #tpu.memory_space<vmem>>, %arg3: memref<1x1x32xf32, #tpu.memory_space<vmem>>, %arg4: memref<1x1x32xf32, #tpu.memory_space<vmem>>, %arg5: memref<1x32x96xbf16, #tpu.memory_space<vmem>>, %arg6: memref<1x1x96xf32, #tpu.memory_space<vmem>>, %arg7: memref<1x32x32xbf16, #tpu.memory_space<vmem>>, %arg8: memref<1x1x32xf32, #tpu.memory_space<vmem>>, %arg9: memref<1x1x32xf32, #tpu.memory_space<vmem>>, %arg10: memref<1x1x32xf32, #tpu.memory_space<vmem>>, %arg11: memref<1x32x128xbf16, #tpu.memory_space<vmem>>, %arg12: memref<1x1x128xf32, #tpu.memory_space<vmem>>, %arg13: memref<1x128x32xbf16, #tpu.memory_space<vmem>>, %arg14: memref<1x1x32xf32, #tpu.memory_space<vmem>>, %arg15: memref<1x32xf32, #tpu.memory_space<vmem>>, %arg16: memref<1x32xf32, #tpu.memory_space<vmem>>, %arg17: memref<32x16xbf16, #tpu.memory_space<vmem>>, %arg18: memref<2x8x16xf32, #tpu.memory_space<vmem>>, %arg19: memref<2x8x32xf32, #tpu.memory_space<vmem>>) attributes {dimension_semantics = [#tpu.dimension_semantics<parallel>, #tpu.dimension_semantics<arbitrary>], iteration_bounds = array<i64: 1, 2>, scalar_prefetch = 0 : i64, scratch_operands = 1 : i64, tpu.core_type = #tpu.core_type<tc>, window_params = [{transform_indices = @transform_0, window_bounds = array<i64: 2, 8, 32>}, {transform_indices = @transform_1, window_bounds = array<i64: 1, 1, 32>}, {transform_indices = @transform_2, window_bounds = array<i64: 1, 1, 32>}, {transform_indices = @transform_3, window_bounds = array<i64: 1, 32, 96>}, {transform_indices = @transform_4, window_bounds = array<i64: 1, 1, 96>}, {transform_indices = @transform_5, window_bounds = array<i64: 1, 32, 32>}, {transform_indices = @transform_6, window_bounds = array<i64: 1, 1, 32>}, {transform_indices = @transform_7, window_bounds = array<i64: 1, 1, 32>}, {transform_indices = @transform_8, window_bounds = array<i64: 1, 1, 32>}, {transform_indices = @transform_9, window_bounds = array<i64: 1, 32, 128>}, {transform_indices = @transform_10, window_bounds = array<i64: 1, 1, 128>}, {transform_indices = @transform_11, window_bounds = array<i64: 1, 128, 32>}, {transform_indices = @transform_12, window_bounds = array<i64: 1, 1, 32>}, {pipeline_mode = #tpu.pipeline_mode<synchronous>, transform_indices = @transform_13, window_bounds = array<i64: 1, 32>}, {pipeline_mode = #tpu.pipeline_mode<synchronous>, transform_indices = @transform_14, window_bounds = array<i64: 1, 32>}, {pipeline_mode = #tpu.pipeline_mode<synchronous>, transform_indices = @transform_15, window_bounds = array<i64: 32, 16>}, {transform_indices = @transform_16, window_bounds = array<i64: 2, 8, 16>}]} {
    %c0_i32 = arith.constant 0 : i32
    %0 = arith.cmpi eq, %arg1, %c0_i32 : i32
    %1 = arith.extui %0 : i1 to i32
    %c0_i32_0 = arith.constant 0 : i32
    %2 = arith.cmpi ne, %1, %c0_i32_0 : i32
    scf.if %2 {
      %c0_80 = arith.constant 0 : index
      %c0_81 = arith.constant 0 : index
      %c0_82 = arith.constant 0 : index
      %215 = vector.load %arg2[%c0_80, %c0_81, %c0_82] : memref<2x8x32xf32, #tpu.memory_space<vmem>>, vector<2x8x32xf32>
      %c0_83 = arith.constant 0 : index
      %c0_84 = arith.constant 0 : index
      %c0_85 = arith.constant 0 : index
      %216 = vector.load %arg19[%c0_83, %c0_84, %c0_85] : memref<2x8x32xf32, #tpu.memory_space<vmem>>, vector<2x8x32xf32>
      tpu.vector_store %arg19[%c0_83, %c0_84, %c0_85], %215 {strides = array<i32>} : memref<2x8x32xf32, #tpu.memory_space<vmem>>, vector<2x8x32xf32>,
    } else {
    }
    %c0 = arith.constant 0 : index
    %c0_1 = arith.constant 0 : index
    %c0_2 = arith.constant 0 : index
    %3 = vector.load %arg19[%c0, %c0_1, %c0_2] : memref<2x8x32xf32, #tpu.memory_space<vmem>>, vector<2x8x32xf32>
    %4 = vector.shape_cast %3 : vector<2x8x32xf32> to vector<16x32xf32>
    %c0_3 = arith.constant 0 : index
    %c0_4 = arith.constant 0 : index
    %c0_5 = arith.constant 0 : index
    %5 = vector.load %arg3[%c0_3, %c0_4, %c0_5] : memref<1x1x32xf32, #tpu.memory_space<vmem>>, vector<1x1x32xf32>
    %6 = vector.shape_cast %5 : vector<1x1x32xf32> to vector<1x32xf32>
    %c0_6 = arith.constant 0 : index
    %c0_7 = arith.constant 0 : index
    %c0_8 = arith.constant 0 : index
    %7 = vector.load %arg4[%c0_6, %c0_7, %c0_8] : memref<1x1x32xf32, #tpu.memory_space<vmem>>, vector<1x1x32xf32>
    %8 = vector.shape_cast %7 : vector<1x1x32xf32> to vector<1x32xf32>
    %cst = arith.constant dense<0.000000e+00> : vector<16xf32>
    %9 = vector.multi_reduction <add>, %4, %cst [1] : vector<16x32xf32> to vector<16xf32>
    %10 = vector.shape_cast %9 : vector<16xf32> to vector<16x1xf32>
    %cst_9 = arith.constant 3.200000e+01 : f32
    %11 = vector.broadcast %cst_9 : f32 to vector<16x1xf32>
    %12 = arith.divf %10, %11 : vector<16x1xf32>
    %13 = vector.broadcast %12 : vector<16x1xf32> to vector<16x32xf32>
    %14 = arith.subf %4, %13 : vector<16x32xf32>
    %15 = arith.mulf %14, %14 : vector<16x32xf32>
    %cst_10 = arith.constant dense<0.000000e+00> : vector<16xf32>
    %16 = vector.multi_reduction <add>, %15, %cst_10 [1] : vector<16x32xf32> to vector<16xf32>
    %17 = vector.shape_cast %16 : vector<16xf32> to vector<16x1xf32>
    %cst_11 = arith.constant 3.200000e+01 : f32
    %18 = vector.broadcast %cst_11 : f32 to vector<16x1xf32>
    %19 = arith.divf %17, %18 : vector<16x1xf32>
    %20 = vector.broadcast %12 : vector<16x1xf32> to vector<16x32xf32>
    %21 = arith.subf %4, %20 : vector<16x32xf32>
    %cst_12 = arith.constant 9.99999974E-6 : f32
    %22 = vector.broadcast %cst_12 : f32 to vector<16x1xf32>
    %23 = arith.addf %19, %22 : vector<16x1xf32>
    %24 = math.rsqrt %23 : vector<16x1xf32>
    %25 = vector.broadcast %24 : vector<16x1xf32> to vector<16x32xf32>
    %26 = arith.mulf %21, %25 : vector<16x32xf32>
    %27 = vector.broadcast %6 : vector<1x32xf32> to vector<16x32xf32>
    %28 = arith.mulf %26, %27 : vector<16x32xf32>
    %29 = vector.broadcast %8 : vector<1x32xf32> to vector<16x32xf32>
    %30 = arith.addf %28, %29 : vector<16x32xf32>
    %31 = arith.truncf %30 : vector<16x32xf32> to vector<16x32xbf16>
    %c0_13 = arith.constant 0 : index
    %c0_14 = arith.constant 0 : index
    %c0_15 = arith.constant 0 : index
    %32 = vector.load %arg5[%c0_13, %c0_14, %c0_15] : memref<1x32x96xbf16, #tpu.memory_space<vmem>>, vector<1x32x96xbf16>
    %33 = vector.shape_cast %32 : vector<1x32x96xbf16> to vector<32x96xbf16>
    %cst_16 = arith.constant dense<0.000000e+00> : vector<16x96xf32>
    %34 = tpu.matmul %31, %33, %cst_16 {dimension_numbers = #tpu.dot_dimension_numbers<[1], [0], [0], [1], [0, 0, 1, 1], [], []>} : vector<16x32xbf16>, vector<32x96xbf16>, vector<16x96xf32> -> vector<16x96xf32>
    %c0_17 = arith.constant 0 : index
    %c0_18 = arith.constant 0 : index
    %c0_19 = arith.constant 0 : index
    %35 = vector.load %arg6[%c0_17, %c0_18, %c0_19] : memref<1x1x96xf32, #tpu.memory_space<vmem>>, vector<1x1x96xf32>
    %36 = vector.shape_cast %35 : vector<1x1x96xf32> to vector<1x96xf32>
    %37 = vector.broadcast %36 : vector<1x96xf32> to vector<16x96xf32>
    %38 = arith.addf %34, %37 : vector<16x96xf32>
    %39 = vector.shape_cast %38 : vector<16x96xf32> to vector<2x8x96xf32>
    %40 = tpu.iota {dimensions = array<i32: 0>} : vector<8x8xi32>
    %41 = tpu.iota {dimensions = array<i32: 1>} : vector<8x8xi32>
    %42 = arith.cmpi sgt, %41, %40 : vector<8x8xi32>
    %cst_20 = arith.constant -1.000000e+30 : f32
    %cst_21 = arith.constant 0.000000e+00 : f32
    %43 = vector.broadcast %cst_20 : f32 to vector<8x8xf32>
    %44 = vector.broadcast %cst_21 : f32 to vector<8x8xf32>
    %45 = arith.select %42, %43, %44 : vector<8x8xi1>, vector<8x8xf32>
    %46 = vector.extract_strided_slice %39 {offsets = [0, 0, 0], sizes = [2, 8, 8], strides = [1, 1, 1]} : vector<2x8x96xf32> to vector<2x8x8xf32>
    %47 = arith.truncf %46 : vector<2x8x8xf32> to vector<2x8x8xbf16>
    %48 = vector.extract_strided_slice %39 {offsets = [0, 0, 32], sizes = [2, 8, 8], strides = [1, 1, 1]} : vector<2x8x96xf32> to vector<2x8x8xf32>
    %49 = arith.truncf %48 : vector<2x8x8xf32> to vector<2x8x8xbf16>
    %50 = vector.extract_strided_slice %39 {offsets = [0, 0, 64], sizes = [2, 8, 8], strides = [1, 1, 1]} : vector<2x8x96xf32> to vector<2x8x8xf32>
    %51 = arith.truncf %50 : vector<2x8x8xf32> to vector<2x8x8xbf16>
    "tpu.trace_start"() <{level = 10 : i32, message = "bqd,bkd->bqk"}> : () -> ()
    %cst_22 = arith.constant dense<0.000000e+00> : vector<2x8x8xf32>
    %52 = tpu.matmul %47, %49, %cst_22 {dimension_numbers = #tpu.dot_dimension_numbers<[2], [2], [1], [1], [0, 0, 0, 1, 1, 1], [0], [0]>} : vector<2x8x8xbf16>, vector<2x8x8xbf16>, vector<2x8x8xf32> -> vector<2x8x8xf32>
    "tpu.trace_stop"() : () -> ()
    %cst_23 = arith.constant 0.353553385 : f32
    %53 = vector.broadcast %cst_23 : f32 to vector<2x8x8xf32>
    %54 = arith.mulf %52, %53 : vector<2x8x8xf32>
    %55 = vector.shape_cast %45 : vector<8x8xf32> to vector<1x8x8xf32>
    %56 = vector.broadcast %55 : vector<1x8x8xf32> to vector<2x8x8xf32>
    %57 = arith.addf %54, %56 : vector<2x8x8xf32>
    %cst_24 = arith.constant dense<0xFF800000> : vector<2x8xf32>
    %58 = vector.multi_reduction <maximumf>, %57, %cst_24 [2] : vector<2x8x8xf32> to vector<2x8xf32>
    %59 = vector.shape_cast %58 : vector<2x8xf32> to vector<2x8x1xf32>
    %60 = vector.broadcast %59 : vector<2x8x1xf32> to vector<2x8x8xf32>
    %61 = arith.subf %57, %60 : vector<2x8x8xf32>
    %62 = math.exp %61 : vector<2x8x8xf32>
    %cst_25 = arith.constant dense<0.000000e+00> : vector<2x8xf32>
    %63 = vector.multi_reduction <add>, %62, %cst_25 [2] : vector<2x8x8xf32> to vector<2x8xf32>
    %64 = vector.shape_cast %63 : vector<2x8xf32> to vector<2x8x1xf32>
    %65 = tpu.reciprocal %64 {approx = true} : vector<2x8x1xf32> -> vector<2x8x1xf32>
    %66 = vector.broadcast %65 : vector<2x8x1xf32> to vector<2x8x8xf32>
    %67 = arith.mulf %62, %66 : vector<2x8x8xf32>
    %68 = arith.truncf %67 : vector<2x8x8xf32> to vector<2x8x8xbf16>
    "tpu.trace_start"() <{level = 10 : i32, message = "bqk,bkd->bqd"}> : () -> ()
    %cst_26 = arith.constant dense<0.000000e+00> : vector<2x8x8xf32>
    %69 = tpu.matmul %68, %51, %cst_26 {dimension_numbers = #tpu.dot_dimension_numbers<[2], [1], [1], [2], [0, 0, 0, 1, 1, 2], [0], [0]>} : vector<2x8x8xbf16>, vector<2x8x8xbf16>, vector<2x8x8xf32> -> vector<2x8x8xf32>
    "tpu.trace_stop"() : () -> ()
    %70 = vector.shape_cast %69 : vector<2x8x8xf32> to vector<16x8xf32>
    %71 = arith.truncf %70 : vector<16x8xf32> to vector<16x8xbf16>
    %72 = vector.extract_strided_slice %39 {offsets = [0, 0, 8], sizes = [2, 8, 8], strides = [1, 1, 1]} : vector<2x8x96xf32> to vector<2x8x8xf32>
    %73 = arith.truncf %72 : vector<2x8x8xf32> to vector<2x8x8xbf16>
    %74 = vector.extract_strided_slice %39 {offsets = [0, 0, 40], sizes = [2, 8, 8], strides = [1, 1, 1]} : vector<2x8x96xf32> to vector<2x8x8xf32>
    %75 = arith.truncf %74 : vector<2x8x8xf32> to vector<2x8x8xbf16>
    %76 = vector.extract_strided_slice %39 {offsets = [0, 0, 72], sizes = [2, 8, 8], strides = [1, 1, 1]} : vector<2x8x96xf32> to vector<2x8x8xf32>
    %77 = arith.truncf %76 : vector<2x8x8xf32> to vector<2x8x8xbf16>
    "tpu.trace_start"() <{level = 10 : i32, message = "bqd,bkd->bqk"}> : () -> ()
    %cst_27 = arith.constant dense<0.000000e+00> : vector<2x8x8xf32>
    %78 = tpu.matmul %73, %75, %cst_27 {dimension_numbers = #tpu.dot_dimension_numbers<[2], [2], [1], [1], [0, 0, 0, 1, 1, 1], [0], [0]>} : vector<2x8x8xbf16>, vector<2x8x8xbf16>, vector<2x8x8xf32> -> vector<2x8x8xf32>
    "tpu.trace_stop"() : () -> ()
    %cst_28 = arith.constant 0.353553385 : f32
    %79 = vector.broadcast %cst_28 : f32 to vector<2x8x8xf32>
    %80 = arith.mulf %78, %79 : vector<2x8x8xf32>
    %81 = vector.shape_cast %45 : vector<8x8xf32> to vector<1x8x8xf32>
    %82 = vector.broadcast %81 : vector<1x8x8xf32> to vector<2x8x8xf32>
    %83 = arith.addf %80, %82 : vector<2x8x8xf32>
    %cst_29 = arith.constant dense<0xFF800000> : vector<2x8xf32>
    %84 = vector.multi_reduction <maximumf>, %83, %cst_29 [2] : vector<2x8x8xf32> to vector<2x8xf32>
    %85 = vector.shape_cast %84 : vector<2x8xf32> to vector<2x8x1xf32>
    %86 = vector.broadcast %85 : vector<2x8x1xf32> to vector<2x8x8xf32>
    %87 = arith.subf %83, %86 : vector<2x8x8xf32>
    %88 = math.exp %87 : vector<2x8x8xf32>
    %cst_30 = arith.constant dense<0.000000e+00> : vector<2x8xf32>
    %89 = vector.multi_reduction <add>, %88, %cst_30 [2] : vector<2x8x8xf32> to vector<2x8xf32>
    %90 = vector.shape_cast %89 : vector<2x8xf32> to vector<2x8x1xf32>
    %91 = tpu.reciprocal %90 {approx = true} : vector<2x8x1xf32> -> vector<2x8x1xf32>
    %92 = vector.broadcast %91 : vector<2x8x1xf32> to vector<2x8x8xf32>
    %93 = arith.mulf %88, %92 : vector<2x8x8xf32>
    %94 = arith.truncf %93 : vector<2x8x8xf32> to vector<2x8x8xbf16>
    "tpu.trace_start"() <{level = 10 : i32, message = "bqk,bkd->bqd"}> : () -> ()
    %cst_31 = arith.constant dense<0.000000e+00> : vector<2x8x8xf32>
    %95 = tpu.matmul %94, %77, %cst_31 {dimension_numbers = #tpu.dot_dimension_numbers<[2], [1], [1], [2], [0, 0, 0, 1, 1, 2], [0], [0]>} : vector<2x8x8xbf16>, vector<2x8x8xbf16>, vector<2x8x8xf32> -> vector<2x8x8xf32>
    "tpu.trace_stop"() : () -> ()
    %96 = vector.shape_cast %95 : vector<2x8x8xf32> to vector<16x8xf32>
    %97 = arith.truncf %96 : vector<16x8xf32> to vector<16x8xbf16>
    %98 = vector.extract_strided_slice %39 {offsets = [0, 0, 16], sizes = [2, 8, 8], strides = [1, 1, 1]} : vector<2x8x96xf32> to vector<2x8x8xf32>
    %99 = arith.truncf %98 : vector<2x8x8xf32> to vector<2x8x8xbf16>
    %100 = vector.extract_strided_slice %39 {offsets = [0, 0, 48], sizes = [2, 8, 8], strides = [1, 1, 1]} : vector<2x8x96xf32> to vector<2x8x8xf32>
    %101 = arith.truncf %100 : vector<2x8x8xf32> to vector<2x8x8xbf16>
    %102 = vector.extract_strided_slice %39 {offsets = [0, 0, 80], sizes = [2, 8, 8], strides = [1, 1, 1]} : vector<2x8x96xf32> to vector<2x8x8xf32>
    %103 = arith.truncf %102 : vector<2x8x8xf32> to vector<2x8x8xbf16>
    "tpu.trace_start"() <{level = 10 : i32, message = "bqd,bkd->bqk"}> : () -> ()
    %cst_32 = arith.constant dense<0.000000e+00> : vector<2x8x8xf32>
    %104 = tpu.matmul %99, %101, %cst_32 {dimension_numbers = #tpu.dot_dimension_numbers<[2], [2], [1], [1], [0, 0, 0, 1, 1, 1], [0], [0]>} : vector<2x8x8xbf16>, vector<2x8x8xbf16>, vector<2x8x8xf32> -> vector<2x8x8xf32>
    "tpu.trace_stop"() : () -> ()
    %cst_33 = arith.constant 0.353553385 : f32
    %105 = vector.broadcast %cst_33 : f32 to vector<2x8x8xf32>
    %106 = arith.mulf %104, %105 : vector<2x8x8xf32>
    %107 = vector.shape_cast %45 : vector<8x8xf32> to vector<1x8x8xf32>
    %108 = vector.broadcast %107 : vector<1x8x8xf32> to vector<2x8x8xf32>
    %109 = arith.addf %106, %108 : vector<2x8x8xf32>
    %cst_34 = arith.constant dense<0xFF800000> : vector<2x8xf32>
    %110 = vector.multi_reduction <maximumf>, %109, %cst_34 [2] : vector<2x8x8xf32> to vector<2x8xf32>
    %111 = vector.shape_cast %110 : vector<2x8xf32> to vector<2x8x1xf32>
    %112 = vector.broadcast %111 : vector<2x8x1xf32> to vector<2x8x8xf32>
    %113 = arith.subf %109, %112 : vector<2x8x8xf32>
    %114 = math.exp %113 : vector<2x8x8xf32>
    %cst_35 = arith.constant dense<0.000000e+00> : vector<2x8xf32>
    %115 = vector.multi_reduction <add>, %114, %cst_35 [2] : vector<2x8x8xf32> to vector<2x8xf32>
    %116 = vector.shape_cast %115 : vector<2x8xf32> to vector<2x8x1xf32>
    %117 = tpu.reciprocal %116 {approx = true} : vector<2x8x1xf32> -> vector<2x8x1xf32>
    %118 = vector.broadcast %117 : vector<2x8x1xf32> to vector<2x8x8xf32>
    %119 = arith.mulf %114, %118 : vector<2x8x8xf32>
    %120 = arith.truncf %119 : vector<2x8x8xf32> to vector<2x8x8xbf16>
    "tpu.trace_start"() <{level = 10 : i32, message = "bqk,bkd->bqd"}> : () -> ()
    %cst_36 = arith.constant dense<0.000000e+00> : vector<2x8x8xf32>
    %121 = tpu.matmul %120, %103, %cst_36 {dimension_numbers = #tpu.dot_dimension_numbers<[2], [1], [1], [2], [0, 0, 0, 1, 1, 2], [0], [0]>} : vector<2x8x8xbf16>, vector<2x8x8xbf16>, vector<2x8x8xf32> -> vector<2x8x8xf32>
    "tpu.trace_stop"() : () -> ()
    %122 = vector.shape_cast %121 : vector<2x8x8xf32> to vector<16x8xf32>
    %123 = arith.truncf %122 : vector<16x8xf32> to vector<16x8xbf16>
    %124 = vector.extract_strided_slice %39 {offsets = [0, 0, 24], sizes = [2, 8, 8], strides = [1, 1, 1]} : vector<2x8x96xf32> to vector<2x8x8xf32>
    %125 = arith.truncf %124 : vector<2x8x8xf32> to vector<2x8x8xbf16>
    %126 = vector.extract_strided_slice %39 {offsets = [0, 0, 56], sizes = [2, 8, 8], strides = [1, 1, 1]} : vector<2x8x96xf32> to vector<2x8x8xf32>
    %127 = arith.truncf %126 : vector<2x8x8xf32> to vector<2x8x8xbf16>
    %128 = vector.extract_strided_slice %39 {offsets = [0, 0, 88], sizes = [2, 8, 8], strides = [1, 1, 1]} : vector<2x8x96xf32> to vector<2x8x8xf32>
    %129 = arith.truncf %128 : vector<2x8x8xf32> to vector<2x8x8xbf16>
    "tpu.trace_start"() <{level = 10 : i32, message = "bqd,bkd->bqk"}> : () -> ()
    %cst_37 = arith.constant dense<0.000000e+00> : vector<2x8x8xf32>
    %130 = tpu.matmul %125, %127, %cst_37 {dimension_numbers = #tpu.dot_dimension_numbers<[2], [2], [1], [1], [0, 0, 0, 1, 1, 1], [0], [0]>} : vector<2x8x8xbf16>, vector<2x8x8xbf16>, vector<2x8x8xf32> -> vector<2x8x8xf32>
    "tpu.trace_stop"() : () -> ()
    %cst_38 = arith.constant 0.353553385 : f32
    %131 = vector.broadcast %cst_38 : f32 to vector<2x8x8xf32>
    %132 = arith.mulf %130, %131 : vector<2x8x8xf32>
    %133 = vector.shape_cast %45 : vector<8x8xf32> to vector<1x8x8xf32>
    %134 = vector.broadcast %133 : vector<1x8x8xf32> to vector<2x8x8xf32>
    %135 = arith.addf %132, %134 : vector<2x8x8xf32>
    %cst_39 = arith.constant dense<0xFF800000> : vector<2x8xf32>
    %136 = vector.multi_reduction <maximumf>, %135, %cst_39 [2] : vector<2x8x8xf32> to vector<2x8xf32>
    %137 = vector.shape_cast %136 : vector<2x8xf32> to vector<2x8x1xf32>
    %138 = vector.broadcast %137 : vector<2x8x1xf32> to vector<2x8x8xf32>
    %139 = arith.subf %135, %138 : vector<2x8x8xf32>
    %140 = math.exp %139 : vector<2x8x8xf32>
    %cst_40 = arith.constant dense<0.000000e+00> : vector<2x8xf32>
    %141 = vector.multi_reduction <add>, %140, %cst_40 [2] : vector<2x8x8xf32> to vector<2x8xf32>
    %142 = vector.shape_cast %141 : vector<2x8xf32> to vector<2x8x1xf32>
    %143 = tpu.reciprocal %142 {approx = true} : vector<2x8x1xf32> -> vector<2x8x1xf32>
    %144 = vector.broadcast %143 : vector<2x8x1xf32> to vector<2x8x8xf32>
    %145 = arith.mulf %140, %144 : vector<2x8x8xf32>
    %146 = arith.truncf %145 : vector<2x8x8xf32> to vector<2x8x8xbf16>
    "tpu.trace_start"() <{level = 10 : i32, message = "bqk,bkd->bqd"}> : () -> ()
    %cst_41 = arith.constant dense<0.000000e+00> : vector<2x8x8xf32>
    %147 = tpu.matmul %146, %129, %cst_41 {dimension_numbers = #tpu.dot_dimension_numbers<[2], [1], [1], [2], [0, 0, 0, 1, 1, 2], [0], [0]>} : vector<2x8x8xbf16>, vector<2x8x8xbf16>, vector<2x8x8xf32> -> vector<2x8x8xf32>
    "tpu.trace_stop"() : () -> ()
    %148 = vector.shape_cast %147 : vector<2x8x8xf32> to vector<16x8xf32>
    %149 = arith.truncf %148 : vector<16x8xf32> to vector<16x8xbf16>
    %150 = tpu.concatenate %71, %97, %123, %149 in 1 : vector<16x8xbf16>, vector<16x8xbf16>, vector<16x8xbf16>, vector<16x8xbf16> -> vector<16x32xbf16>
    %c0_42 = arith.constant 0 : index
    %c0_43 = arith.constant 0 : index
    %c0_44 = arith.constant 0 : index
    %151 = vector.load %arg7[%c0_42, %c0_43, %c0_44] : memref<1x32x32xbf16, #tpu.memory_space<vmem>>, vector<1x32x32xbf16>
    %152 = vector.shape_cast %151 : vector<1x32x32xbf16> to vector<32x32xbf16>
    %cst_45 = arith.constant dense<0.000000e+00> : vector<16x32xf32>
    %153 = tpu.matmul %150, %152, %cst_45 {dimension_numbers = #tpu.dot_dimension_numbers<[1], [0], [0], [1], [0, 0, 1, 1], [], []>} : vector<16x32xbf16>, vector<32x32xbf16>, vector<16x32xf32> -> vector<16x32xf32>
    %154 = arith.addf %4, %153 : vector<16x32xf32>
    %c0_46 = arith.constant 0 : index
    %c0_47 = arith.constant 0 : index
    %c0_48 = arith.constant 0 : index
    %155 = vector.load %arg8[%c0_46, %c0_47, %c0_48] : memref<1x1x32xf32, #tpu.memory_space<vmem>>, vector<1x1x32xf32>
    %156 = vector.shape_cast %155 : vector<1x1x32xf32> to vector<1x32xf32>
    %157 = vector.broadcast %156 : vector<1x32xf32> to vector<16x32xf32>
    %158 = arith.addf %154, %157 : vector<16x32xf32>
    %c0_49 = arith.constant 0 : index
    %c0_50 = arith.constant 0 : index
    %c0_51 = arith.constant 0 : index
    %159 = vector.load %arg9[%c0_49, %c0_50, %c0_51] : memref<1x1x32xf32, #tpu.memory_space<vmem>>, vector<1x1x32xf32>
    %160 = vector.shape_cast %159 : vector<1x1x32xf32> to vector<1x32xf32>
    %c0_52 = arith.constant 0 : index
    %c0_53 = arith.constant 0 : index
    %c0_54 = arith.constant 0 : index
    %161 = vector.load %arg10[%c0_52, %c0_53, %c0_54] : memref<1x1x32xf32, #tpu.memory_space<vmem>>, vector<1x1x32xf32>
    %162 = vector.shape_cast %161 : vector<1x1x32xf32> to vector<1x32xf32>
    %cst_55 = arith.constant dense<0.000000e+00> : vector<16xf32>
    %163 = vector.multi_reduction <add>, %158, %cst_55 [1] : vector<16x32xf32> to vector<16xf32>
    %164 = vector.shape_cast %163 : vector<16xf32> to vector<16x1xf32>
    %cst_56 = arith.constant 3.200000e+01 : f32
    %165 = vector.broadcast %cst_56 : f32 to vector<16x1xf32>
    %166 = arith.divf %164, %165 : vector<16x1xf32>
    %167 = vector.broadcast %166 : vector<16x1xf32> to vector<16x32xf32>
    %168 = arith.subf %158, %167 : vector<16x32xf32>
    %169 = arith.mulf %168, %168 : vector<16x32xf32>
    %cst_57 = arith.constant dense<0.000000e+00> : vector<16xf32>
    %170 = vector.multi_reduction <add>, %169, %cst_57 [1] : vector<16x32xf32> to vector<16xf32>
    %171 = vector.shape_cast %170 : vector<16xf32> to vector<16x1xf32>
    %cst_58 = arith.constant 3.200000e+01 : f32
    %172 = vector.broadcast %cst_58 : f32 to vector<16x1xf32>
    %173 = arith.divf %171, %172 : vector<16x1xf32>
    %174 = vector.broadcast %166 : vector<16x1xf32> to vector<16x32xf32>
    %175 = arith.subf %158, %174 : vector<16x32xf32>
    %cst_59 = arith.constant 9.99999974E-6 : f32
    %176 = vector.broadcast %cst_59 : f32 to vector<16x1xf32>
    %177 = arith.addf %173, %176 : vector<16x1xf32>
    %178 = math.rsqrt %177 : vector<16x1xf32>
    %179 = vector.broadcast %178 : vector<16x1xf32> to vector<16x32xf32>
    %180 = arith.mulf %175, %179 : vector<16x32xf32>
    %181 = vector.broadcast %160 : vector<1x32xf32> to vector<16x32xf32>
    %182 = arith.mulf %180, %181 : vector<16x32xf32>
    %183 = vector.broadcast %162 : vector<1x32xf32> to vector<16x32xf32>
    %184 = arith.addf %182, %183 : vector<16x32xf32>
    %185 = arith.truncf %184 : vector<16x32xf32> to vector<16x32xbf16>
    %c0_60 = arith.constant 0 : index
    %c0_61 = arith.constant 0 : index
    %c0_62 = arith.constant 0 : index
    %186 = vector.load %arg11[%c0_60, %c0_61, %c0_62] : memref<1x32x128xbf16, #tpu.memory_space<vmem>>, vector<1x32x128xbf16>
    %187 = vector.shape_cast %186 : vector<1x32x128xbf16> to vector<32x128xbf16>
    %cst_63 = arith.constant dense<0.000000e+00> : vector<16x128xf32>
    %188 = tpu.matmul %185, %187, %cst_63 {dimension_numbers = #tpu.dot_dimension_numbers<[1], [0], [0], [1], [0, 0, 1, 1], [], []>} : vector<16x32xbf16>, vector<32x128xbf16>, vector<16x128xf32> -> vector<16x128xf32>
    %c0_64 = arith.constant 0 : index
    %c0_65 = arith.constant 0 : index
    %c0_66 = arith.constant 0 : index
    %189 = vector.load %arg12[%c0_64, %c0_65, %c0_66] : memref<1x1x128xf32, #tpu.memory_space<vmem>>, vector<1x1x128xf32>
    %190 = vector.shape_cast %189 : vector<1x1x128xf32> to vector<1x128xf32>
    %191 = vector.broadcast %190 : vector<1x128xf32> to vector<16x128xf32>
    %192 = arith.addf %188, %191 : vector<16x128xf32>
    %cst_67 = arith.constant 1.702000e+00 : f32
    %193 = vector.broadcast %cst_67 : f32 to vector<16x128xf32>
    %194 = arith.mulf %193, %192 : vector<16x128xf32>
    %195 = arith.negf %194 : vector<16x128xf32>
    %196 = math.exp %195 : vector<16x128xf32>
    %cst_68 = arith.constant 1.000000e+00 : f32
    %197 = vector.broadcast %cst_68 : f32 to vector<16x128xf32>
    %198 = arith.addf %197, %196 : vector<16x128xf32>
    %199 = arith.divf %197, %198 : vector<16x128xf32>
    %200 = arith.mulf %192, %199 : vector<16x128xf32>
    %201 = arith.truncf %200 : vector<16x128xf32> to vector<16x128xbf16>
    %c0_69 = arith.constant 0 : index
    %c0_70 = arith.constant 0 : index
    %c0_71 = arith.constant 0 : index
    %202 = vector.load %arg13[%c0_69, %c0_70, %c0_71] : memref<1x128x32xbf16, #tpu.memory_space<vmem>>, vector<1x128x32xbf16>
    %203 = vector.shape_cast %202 : vector<1x128x32xbf16> to vector<128x32xbf16>
    %cst_72 = arith.constant dense<0.000000e+00> : vector<16x32xf32>
    %204 = tpu.matmul %201, %203, %cst_72 {dimension_numbers = #tpu.dot_dimension_numbers<[1], [0], [0], [1], [0, 0, 1, 1], [], []>} : vector<16x128xbf16>, vector<128x32xbf16>, vector<16x32xf32> -> vector<16x32xf32>
    %c0_73 = arith.constant 0 : index
    %c0_74 = arith.constant 0 : index
    %c0_75 = arith.constant 0 : index
    %205 = vector.load %arg14[%c0_73, %c0_74, %c0_75] : memref<1x1x32xf32, #tpu.memory_space<vmem>>, vector<1x1x32xf32>
    %206 = vector.shape_cast %205 : vector<1x1x32xf32> to vector<1x32xf32>
    %207 = vector.broadcast %206 : vector<1x32xf32> to vector<16x32xf32>
    %208 = arith.addf %204, %207 : vector<16x32xf32>
    %209 = arith.addf %158, %208 : vector<16x32xf32>
    %210 = vector.shape_cast %209 : vector<16x32xf32> to vector<2x8x32xf32>
    %c0_76 = arith.constant 0 : index
    %c0_77 = arith.constant 0 : index
    %c0_78 = arith.constant 0 : index
    %211 = vector.load %arg19[%c0_76, %c0_77, %c0_78] : memref<2x8x32xf32, #tpu.memory_space<vmem>>, vector<2x8x32xf32>
    tpu.vector_store %arg19[%c0_76, %c0_77, %c0_78], %210 {strides = array<i32>} : memref<2x8x32xf32, #tpu.memory_space<vmem>>, vector<2x8x32xf32>,
    %c1_i32 = arith.constant 1 : i32
    %212 = arith.cmpi eq, %arg1, %c1_i32 : i32
    %213 = arith.extui %212 : i1 to i32
    %c0_i32_79 = arith.constant 0 : i32
    %214 = arith.cmpi ne, %213, %c0_i32_79 : i32
    scf.if %214 {
      %c0_80 = arith.constant 0 : index
      %c0_81 = arith.constant 0 : index
      %215 = vector.load %arg15[%c0_80, %c0_81] : memref<1x32xf32, #tpu.memory_space<vmem>>, vector<1x32xf32>
      %c0_82 = arith.constant 0 : index
      %c0_83 = arith.constant 0 : index
      %216 = vector.load %arg16[%c0_82, %c0_83] : memref<1x32xf32, #tpu.memory_space<vmem>>, vector<1x32xf32>
      %cst_84 = arith.constant dense<0.000000e+00> : vector<16xf32>
      %217 = vector.multi_reduction <add>, %209, %cst_84 [1] : vector<16x32xf32> to vector<16xf32>
      %218 = vector.shape_cast %217 : vector<16xf32> to vector<16x1xf32>
      %cst_85 = arith.constant 3.200000e+01 : f32
      %219 = vector.broadcast %cst_85 : f32 to vector<16x1xf32>
      %220 = arith.divf %218, %219 : vector<16x1xf32>
      %221 = vector.broadcast %220 : vector<16x1xf32> to vector<16x32xf32>
      %222 = arith.subf %209, %221 : vector<16x32xf32>
      %223 = arith.mulf %222, %222 : vector<16x32xf32>
      %cst_86 = arith.constant dense<0.000000e+00> : vector<16xf32>
      %224 = vector.multi_reduction <add>, %223, %cst_86 [1] : vector<16x32xf32> to vector<16xf32>
      %225 = vector.shape_cast %224 : vector<16xf32> to vector<16x1xf32>
      %cst_87 = arith.constant 3.200000e+01 : f32
      %226 = vector.broadcast %cst_87 : f32 to vector<16x1xf32>
      %227 = arith.divf %225, %226 : vector<16x1xf32>
      %228 = vector.broadcast %220 : vector<16x1xf32> to vector<16x32xf32>
      %229 = arith.subf %209, %228 : vector<16x32xf32>
      %cst_88 = arith.constant 9.99999974E-6 : f32
      %230 = vector.broadcast %cst_88 : f32 to vector<16x1xf32>
      %231 = arith.addf %227, %230 : vector<16x1xf32>
      %232 = math.rsqrt %231 : vector<16x1xf32>
      %233 = vector.broadcast %232 : vector<16x1xf32> to vector<16x32xf32>
      %234 = arith.mulf %229, %233 : vector<16x32xf32>
      %235 = vector.broadcast %215 : vector<1x32xf32> to vector<16x32xf32>
      %236 = arith.mulf %234, %235 : vector<16x32xf32>
      %237 = vector.broadcast %216 : vector<1x32xf32> to vector<16x32xf32>
      %238 = arith.addf %236, %237 : vector<16x32xf32>
      %239 = arith.truncf %238 : vector<16x32xf32> to vector<16x32xbf16>
      %c0_89 = arith.constant 0 : index
      %c0_90 = arith.constant 0 : index
      %240 = vector.load %arg17[%c0_89, %c0_90] : memref<32x16xbf16, #tpu.memory_space<vmem>>, vector<32x16xbf16>
      %cst_91 = arith.constant dense<0.000000e+00> : vector<16x16xf32>
      %241 = tpu.matmul %239, %240, %cst_91 {dimension_numbers = #tpu.dot_dimension_numbers<[1], [0], [0], [1], [0, 0, 1, 1], [], []>} : vector<16x32xbf16>, vector<32x16xbf16>, vector<16x16xf32> -> vector<16x16xf32>
      %242 = vector.shape_cast %241 : vector<16x16xf32> to vector<2x8x16xf32>
      %c0_92 = arith.constant 0 : index
      %c0_93 = arith.constant 0 : index
      %c0_94 = arith.constant 0 : index
      %243 = vector.load %arg18[%c0_92, %c0_93, %c0_94] : memref<2x8x16xf32, #tpu.memory_space<vmem>>, vector<2x8x16xf32>
      tpu.vector_store %arg18[%c0_92, %c0_93, %c0_94], %242 {strides = array<i32>} : memref<2x8x16xf32, #tpu.memory_space<vmem>>, vector<2x8x16xf32>,
    } else {
    }
    return
  }
  func.func @transform_0(%arg0: i32, %arg1: i32) -> (i32, i32, i32) {
    %c0_i32 = arith.constant 0 : i32
    %c0_i32_0 = arith.constant 0 : i32
    %c0_i32_1 = arith.constant 0 : i32
    return %arg0, %c0_i32, %c0_i32_0 : i32, i32, i32
  }
  func.func @transform_1(%arg0: i32, %arg1: i32) -> (i32, i32, i32) {
    %c0_i32 = arith.constant 0 : i32
    %c0_i32_0 = arith.constant 0 : i32
    %c0_i32_1 = arith.constant 0 : i32
    return %arg1, %c0_i32, %c0_i32_0 : i32, i32, i32
  }
  func.func @transform_2(%arg0: i32, %arg1: i32) -> (i32, i32, i32) {
    %c0_i32 = arith.constant 0 : i32
    %c0_i32_0 = arith.constant 0 : i32
    %c0_i32_1 = arith.constant 0 : i32
    return %arg1, %c0_i32, %c0_i32_0 : i32, i32, i32
  }
  func.func @transform_3(%arg0: i32, %arg1: i32) -> (i32, i32, i32) {
    %c0_i32 = arith.constant 0 : i32
    %c0_i32_0 = arith.constant 0 : i32
    %c0_i32_1 = arith.constant 0 : i32
    return %arg1, %c0_i32, %c0_i32_0 : i32, i32, i32
  }
  func.func @transform_4(%arg0: i32, %arg1: i32) -> (i32, i32, i32) {
    %c0_i32 = arith.constant 0 : i32
    %c0_i32_0 = arith.constant 0 : i32
    %c0_i32_1 = arith.constant 0 : i32
    return %arg1, %c0_i32, %c0_i32_0 : i32, i32, i32
  }
  func.func @transform_5(%arg0: i32, %arg1: i32) -> (i32, i32, i32) {
    %c0_i32 = arith.constant 0 : i32
    %c0_i32_0 = arith.constant 0 : i32
    %c0_i32_1 = arith.constant 0 : i32
    return %arg1, %c0_i32, %c0_i32_0 : i32, i32, i32
  }
  func.func @transform_6(%arg0: i32, %arg1: i32) -> (i32, i32, i32) {
    %c0_i32 = arith.constant 0 : i32
    %c0_i32_0 = arith.constant 0 : i32
    %c0_i32_1 = arith.constant 0 : i32
    return %arg1, %c0_i32, %c0_i32_0 : i32, i32, i32
  }
  func.func @transform_7(%arg0: i32, %arg1: i32) -> (i32, i32, i32) {
    %c0_i32 = arith.constant 0 : i32
    %c0_i32_0 = arith.constant 0 : i32
    %c0_i32_1 = arith.constant 0 : i32
    return %arg1, %c0_i32, %c0_i32_0 : i32, i32, i32
  }
  func.func @transform_8(%arg0: i32, %arg1: i32) -> (i32, i32, i32) {
    %c0_i32 = arith.constant 0 : i32
    %c0_i32_0 = arith.constant 0 : i32
    %c0_i32_1 = arith.constant 0 : i32
    return %arg1, %c0_i32, %c0_i32_0 : i32, i32, i32
  }
  func.func @transform_9(%arg0: i32, %arg1: i32) -> (i32, i32, i32) {
    %c0_i32 = arith.constant 0 : i32
    %c0_i32_0 = arith.constant 0 : i32
    %c0_i32_1 = arith.constant 0 : i32
    return %arg1, %c0_i32, %c0_i32_0 : i32, i32, i32
  }
  func.func @transform_10(%arg0: i32, %arg1: i32) -> (i32, i32, i32) {
    %c0_i32 = arith.constant 0 : i32
    %c0_i32_0 = arith.constant 0 : i32
    %c0_i32_1 = arith.constant 0 : i32
    return %arg1, %c0_i32, %c0_i32_0 : i32, i32, i32
  }
  func.func @transform_11(%arg0: i32, %arg1: i32) -> (i32, i32, i32) {
    %c0_i32 = arith.constant 0 : i32
    %c0_i32_0 = arith.constant 0 : i32
    %c0_i32_1 = arith.constant 0 : i32
    return %arg1, %c0_i32, %c0_i32_0 : i32, i32, i32
  }
  func.func @transform_12(%arg0: i32, %arg1: i32) -> (i32, i32, i32) {
    %c0_i32 = arith.constant 0 : i32
    %c0_i32_0 = arith.constant 0 : i32
    %c0_i32_1 = arith.constant 0 : i32
    return %arg1, %c0_i32, %c0_i32_0 : i32, i32, i32
  }
  func.func @transform_13(%arg0: i32, %arg1: i32) -> (i32, i32) {
    %c0_i32 = arith.constant 0 : i32
    %c0_i32_0 = arith.constant 0 : i32
    %c0_i32_1 = arith.constant 0 : i32
    return %c0_i32, %c0_i32_0 : i32, i32
  }
  func.func @transform_14(%arg0: i32, %arg1: i32) -> (i32, i32) {
    %c0_i32 = arith.constant 0 : i32
    %c0_i32_0 = arith.constant 0 : i32
    %c0_i32_1 = arith.constant 0 : i32
    return %c0_i32, %c0_i32_0 : i32, i32
  }
  func.func @transform_15(%arg0: i32, %arg1: i32) -> (i32, i32) {
    %c0_i32 = arith.constant 0 : i32
    %c0_i32_0 = arith.constant 0 : i32
    %c0_i32_1 = arith.constant 0 : i32
    return %c0_i32, %c0_i32_0 : i32, i32
  }
  func.func @transform_16(%arg0: i32, %arg1: i32) -> (i32, i32, i32) {
    %c0_i32 = arith.constant 0 : i32
    %c0_i32_0 = arith.constant 0 : i32
    %c0_i32_1 = arith.constant 0 : i32
    return %arg0, %c0_i32, %c0_i32_0 : i32, i32, i32
  }
}

</mosaic_0001>

<bundles_post_ra>
// kernel: tpu_custom_call.1
= control target key start
LH: loop header
LB: loop body
LE: loop exit
PB: predicated region body
PF: predicated region fallthrough
CT: control target
= control target key end

     0   :  { %s3341_s0 = inlined_call_operand.vmem [shape: f32[2,8,32], index: 0, kind: input, shape index: {}]   ;;  %s3342_s1 = inlined_call_operand.vmem [shape: f32[2,1,32], index: 1, kind: input, shape index: {}]   ;;  %s3343_s2 = inlined_call_operand.vmem [shape: f32[2,1,32], index: 2, kind: input, shape index: {}]   ;;  %s3344_s3 = inlined_call_operand.vmem [shape: bf16[2,32,96], index: 3, kind: input, shape index: {}]   ;;  %s3345_s4 = inlined_call_operand.vmem [shape: f32[2,1,96], index: 4, kind: input, shape index: {}]   ;;  %s3346_s5 = inlined_call_operand.vmem [shape: bf16[2,32,32], index: 5, kind: input, shape index: {}]   ;;  %s3347_s6 = inlined_call_operand.vmem [shape: f32[2,1,32], index: 6, kind: input, shape index: {}]   ;;  %s3348_s7 = inlined_call_operand.vmem [shape: f32[2,1,32], index: 7, kind: input, shape index: {}]   ;;  %s3349_s8 = inlined_call_operand.vmem [shape: f32[2,1,32], index: 8, kind: input, shape index: {}]   ;;  %s3350_s9 = inlined_call_operand.vmem [shape: bf16[2,32,128], index: 9, kind: input, shape index: {}]   ;;  %s3351_s10 = inlined_call_operand.vmem [shape: f32[2,1,128], index: 10, kind: input, shape index: {}]   ;;  %s3352_s11 = inlined_call_operand.vmem [shape: bf16[2,128,32], index: 11, kind: input, shape index: {}]   ;;  %s3353_s12 = inlined_call_operand.vmem [shape: f32[2,1,32], index: 12, kind: input, shape index: {}]   ;;  %s3354_s13 = inlined_call_operand.vmem [shape: f32[1,32], index: 13, kind: input, shape index: {}]   ;;  %s3355_s14 = inlined_call_operand.vmem [shape: f32[1,32], index: 14, kind: input, shape index: {}]   ;;  %s3356_s15 = inlined_call_operand.vmem [shape: bf16[32,16], index: 15, kind: input, shape index: {}]   ;;  %s3357_s16 = inlined_call_operand.hbm [shape: f32[2,8,16], index: 16, kind: output, shape index: {}]  }
   0x1   :  { %3363 = sst [smem:[#allocation9_spill]] %s3341_s0 }
   0x2   :  { %3364 = sst [smem:[#allocation10_spill]] %s3344_s3 }
   0x3   :  { %3365 = sst [smem:[#allocation11_spill]] %s3346_s5 }
   0x4   :  { %3366 = sst [smem:[#allocation12_spill]] %s3354_s13 }
   0x5   :  { %3367 = sst [smem:[#allocation13_spill]] %s3355_s14 }
   0x6   :  { %3368 = sst [smem:[#allocation14_spill]] %s3356_s15 }
   0x7   :  { %3369 = sst [smem:[#allocation15_spill]] %s3357_s16 }
   0x8   :  { %21 = vsyncpa [#allocation4], 0  ;;  %s2932_s21 = smov 0   ;;  %s2934_s22 = smov 0  }
   0x9   :  { %s2936_s23 = smov 0  }
   0xa LB: > { %3370 = sst [smem:[#allocation6_spill]] %s2821_s22  ;;  %s36_s25 = sadd.s32 1, %s2821_s22  ;;  %s2825_s23 = sphi %s2936_s23, %s27_s23   ;;  %s2821_s22 = sphi %s2934_s22, %s3390_s22   ;;  %s2817_s21 = sphi %s2932_s21, %s3389_s21  }
   0xb   : > { %3371 = sst [smem:[#allocation7_spill]] %s2825_s23  ;;  %p37_p0 = scmp.ge.s32.totalorder %s36_s25, 2 }
   0xc   : > { %p2387_p1 = scmp.ge.s32.totalorder %s2825_s23, 1  ;;  %p580_p2 = scmp.lt.s32.totalorder %s2825_s23, 3 }
   0xd   : > { %s3392_s25 = smov (%p37_p0, %s36_s25), 0 }
   0xe   : > { %3372 = sst [smem:[#allocation8_spill]] %s3392_s25  ;;  %p581_p3 = pnand %p2387_p1, %p580_p2 }
   0xf   : > { %p675_p4 = scmp.lt.s32.totalorder (!%p581_p3), %s2817_s21, 1  ;;  %s3373_s3 = sld [smem:[#allocation10_spill]] (!%p581_p3) }
  0x10   : > { %584 = sbr.rel (%p581_p3) target bundleno = 4760 (0x1298), region = 84  ;;  %s3374_s5 = sld [smem:[#allocation11_spill]] (!%p581_p3) }
  0x11   : > { %p2396_p5 = scmp.ne.s32.totalorder (!%p581_p3), %s2817_s21, 0 }
  0x17   : > { %s2955_s26 = scalar_select %p675_p4, %s2817_s21, 1 }
  0x18   : > { %724 = sbr.rel (%p2396_p5) target bundleno = 32 (0x20), region = 88  ;;  %s3375_s27 = sld [smem:[#allocation9_spill]] (!%p2396_p5)  ;;  %vm727_vm0 = vcmask (!%p2396_p5), 261120  }
  0x19   : > { %s2450_s18 = sshll.u32 %s2955_s26, 4  ;;  %s699_s13 = scalar_lea.vmem %s3348_s7, %s2955_s26 }
  0x1a   : > { %s2973_s25 = scalar_lea.vmem %s3373_s3, %s2450_s18  ;;  %s2978_s23 = scalar_lea.vmem %s3374_s5, %s2450_s18 }
  0x1b   : > { %s702_s24 = scalar_lea.vmem %s3349_s8, %s2955_s26  ;;  %s2995_s3 = scalar_lea.vmem %s3350_s9, %s2450_s18 }
  0x1c   : > { %s710_s5 = scalar_lea.vmem %s3351_s10, %s2955_s26  ;;  %s2453_s15 = sshll.u32 %s2955_s26, 6 }
  0x1d   : > { %s3005_s30 = scalar_lea.vmem %s3352_s11, %s2453_s15  ;;  %s718_s19 = scalar_lea.vmem %s3353_s12, %s2955_s26 }
  0x1e   : > { %v725_v0 = vld [vmem:[%s3375_s27] sm:$0xff] (!%p2396_p5)  ;;  %v726_v1 = vld [vmem:[%s3375_s27 + $0x8] sm:$0xff] (!%p2396_p5) }
  0x1f   : > { %728 = vst.msk [vmem:[#allocation2] sm:$0xff] %vm727_vm0, %v725_v0  ;;  %729 = vst.msk [vmem:[#allocation2 + $0x8] sm:$0xff] %vm727_vm0, %v726_v1 }
  0x20 PF: > { %vm734_vm1 = vcmask 261120   ;;  %v2705_v16 = vld [vmem:[%s2973_s25] sm:$0xff]   ;;  %v2827_v17 = vmov 0.0   ;;  %v2706_v18 = vld [vmem:[%s2973_s25 + $0x8] sm:$0xff]   ;;  %vm2828_vm2 = vmmov 0   ;;  %s3376_s22 = scalar_lea.vmem %s3342_s1, %s2955_s26  ;;  %s3377_s17 = scalar_lea.vmem %s3343_s2, %s2955_s26  ;;  %vm857_vm3 = vcmask 64512  }
  0x21   : > { %2507 = vmatprep.subr.bf16.mxu0 %v2827_v17  ;;  %2527 = vmatprep.subr.bf16.mxu1 %v2827_v17  ;;  %v2397_v27 = vld [vmem:[%s3376_s22] ss:$0 sm:$0xff]  ;;  %s3378_s18 = scalar_lea.vmem %s3345_s4, %s2955_s26  ;;  %s2829_s28 = smov 96   ;;  %v846_v49 = vlaneseq  ;;  %vm986_vm5 = vcmask 1043456   ;;  %vm1766_vm6 = vcmask 130048   ;;  %vm1769_vm7 = vcmask 195584  }
  0x22   : > { %2508 = vmatpush3.bf16.msra.mxu0 %v2705_v16  ;;  %2511 = vmatprep.mubr.msk.bf16.mxu0 %vm2828_vm2, %v2827_v17  ;;  %v2398_v31 = vld [vmem:[%s3377_s17] ss:$0 sm:$0xff]  ;;  %s2830_s16 = smov 64   ;;  %s2831_s15 = smov 88  }
  0x23   : > { %2509 = vmatprep.subr.bf16.mxu0 %v2827_v17  ;;  %2529 = vmatprep.mubr.msk.bf16.mxu1 %vm2828_vm2, %v2827_v17  ;;  %v2399_v36 = vld [vmem:[%s3378_s18] ss:$0 sm:$0xff]  ;;  %v847_v50 = vshrl.u32 %v846_v49, 7  ;;  %v849_v51 = vand.u32 127, %v846_v49  ;;  %s2832_s25 = smov 120   ;;  %s2833_s22 = smov 56  }
  0x24   : > { %s2834_s14 = smov 80   ;;  %s2835_s29 = smov 112  }
  0x25   : > { %vm850_vm4 = vcmp.gt.s32.totalorder %v849_v51, %v847_v50  ;;  %s2836_s17 = smov 48   ;;  %s2837_s0 = smov 72  }
  0x26   : > { %v3018_v2 = vld [vmem:[#allocation2] sm:$0xff]  ;;  %v3020_v3 = vld [vmem:[#allocation2 + $0x8] sm:$0xff]  ;;  %2510 = vmatpush3.bf16.msra.mxu0 %v2706_v18  ;;  %v3077_v53 = vsel %vm850_vm4, -1e+30, %v2827_v17  ;;  %s2838_s20 = smov 104   ;;  %s2839_s18 = smov 40  }
  0x27   : > { %v735_v4 = vsel %vm734_vm1, %v3018_v2, 0.0  ;;  %v738_v5 = vsel %vm734_vm1, %v3020_v3, 0.0  ;;  %2515 = vmatprep.subr.bf16.mxu0 %v2827_v17  ;;  %p2440_p6 = scmp.ne.s32.totalorder %s2817_s21, 1 }
  0x28   : > { %736 = vadd.xlane.f32.xlu0 %v735_v4  ;;  %vm2844_vm8 = vmmov (!%p2440_p6), 0  }
  0x2c   : > { %739 = vadd.xlane.f32.xlu0 %v738_v5 }
  0xb5   : > { %v737_v6 = vpop.xlane.xlu0 %736 }
  0xb6   : > { %v742_v7 = vmul.f32 0.03125, %v737_v6 }
  0xb8   : > { %v744_v8 = vsub.f32 %v3018_v2, %v742_v7 }
  0xb9   : > { %v740_v9 = vpop.xlane.xlu0 %739 }
  0xba   : > { %v743_v10 = vmul.f32 0.03125, %v740_v9  ;;  %v746_v11 = vmul.f32 %v744_v8, %v744_v8 }
  0xbc   : > { %v745_v12 = vsub.f32 %v3020_v3, %v743_v10  ;;  %v748_v13 = vsel %vm734_vm1, %v746_v11, 0.0 }
  0xbd   : > { %749 = vadd.xlane.f32.xlu1 %v748_v13 }
  0xbe   : > { %v747_v14 = vmul.f32 %v745_v12, %v745_v12 }
  0xc0   : > { %v751_v15 = vsel %vm734_vm1, %v747_v14, 0.0 }
  0xc1   : > { %752 = vadd.xlane.f32.xlu1 %v751_v15 }
 0x14a   : > { %v750_v19 = vpop.xlane.xlu1 %749 }
 0x14b   : > { %v754_v20 = vmul.f32 0.03125, %v750_v19 }
 0x14d   : > { %v756_v21 = vadd.f32 1e-05, %v754_v20 }
 0x14e   : > { %v753_v22 = vpop.xlane.xlu1 %752 }
 0x14f   : > { %2719 = vrsqrt.f32 %v756_v21  ;;  %v755_v23 = vmul.f32 0.03125, %v753_v22 }
 0x151   : > { %v757_v24 = vadd.f32 1e-05, %v755_v23 }
 0x153   : > { %2721 = vrsqrt.f32 %v757_v24 }
 0x159   : > { %v2720_v25 = vpop.eup %2719 }
 0x15a   : > { %v760_v26 = vmul.f32 %v2720_v25, %v744_v8 }
 0x15c   : > { %v768_v30 = vmul.f32 %v2397_v27, %v760_v26 }
 0x15d   : > { %v2722_v28 = vpop.eup %2721 }
 0x15e   : > { %v761_v29 = vmul.f32 %v2722_v28, %v745_v12  ;;  %v776_v33 = vadd.f32 %v2398_v31, %v768_v30 }
 0x160   : > { %v769_v32 = vmul.f32 %v2397_v27, %v761_v29 }
 0x162   : > { %v777_v34 = vadd.f32 %v2398_v31, %v769_v32 }
 0x164   : > { %v778_v35 = vpack.c.bf16 %v777_v34, %v776_v33 }
 0x166   : > { %2512 = vmatmul.mubr.msk.bf16.vlgmr.msra.gmra.mrb[0].mxu0 %vm734_vm1, %v778_v35 }
 0x167   : > { %2517 = vmatprep.mubr.msk.bf16.mxu0 %vm2828_vm2, %v2827_v17 }
 0x239   : > { %v839_v37 = vpop.f32.mrb[0].mxu0 }
 0x23a   : > { %v840_v38 = vadd.f32 %v2399_v36, %v839_v37  ;;  %v2513_v39 = vpop.f32.mrb[1].mxu0 }
 0x23b   : > { %v842_v40 = vpop.f32.mrb[2].mxu0 }
 0x23c   : > { %v3058_v41 = vpack.c.bf16 %v840_v38, %v840_v38  ;;  %v843_v42 = vadd.f32 %v2399_v36, %v842_v40  ;;  %v2514_v43 = vpop.f32.mrb[3].mxu0 }
 0x23e   : > { %v3060_v44 = vpack.c.bf16 %v843_v42, %v843_v42  ;;  %855 = vrot.lane.b32.xlu0 %v3058_v41, %s2829_s28 }
 0x240   : > { %905 = vrot.lane.b32.xlu1 %v3060_v44, %s2829_s28  ;;  %s2840_s28 = smov 8  }
 0x2b0   : > { %v856_v45 = vpop.permute.xlu0 %855 }
 0x2b1   : > { %v862_v46 = vsel %vm857_vm3, %v856_v45, 0 }
 0x2b2   : > { %2516 = vmatpush3.bf16.xpose.msra.mxu0 %v862_v46  ;;  %v906_v47 = vpop.permute.xlu1 %905 }
 0x2b3   : > { %2521 = vmatprep.subr.bf16.mxu0 %v2827_v17  ;;  %v911_v48 = vsel %vm857_vm3, %v906_v47, 0 }
 0x2b9   : > { %2518 = vmatmul.mubr.msk.bf16.vlgmr.msra.gmra.mrb[4].mxu0 %vm857_vm3, %v3058_v41 }
 0x2ba   : > { %2522 = vmatpush3.bf16.xpose.msra.mxu0 %v911_v48  ;;  %2523 = vmatprep.mubr.msk.bf16.mxu0 %vm2828_vm2, %v2827_v17 }
 0x2bb   : > { %2533 = vmatprep.subr.bf16.mxu0 %v2827_v17 }
 0x2c1   : > { %2524 = vmatmul.mubr.msk.bf16.vlgmr.msra.gmra.mrb[8].mxu0 %vm857_vm3, %v3060_v44 }
 0x2c2   : > { %2535 = vmatprep.mubr.msk.bf16.mxu0 %vm2828_vm2, %v2827_v17 }
 0x38c   : > { %v898_v52 = vpop.f32.mrb[4].mxu0 }
 0x38d   : > { %v953_v54 = vmul.f32 0.35355338, %v898_v52  ;;  %v2519_v55 = vpop.f32.mrb[5].mxu0 }
 0x38e   : > { %v901_v56 = vpop.f32.mrb[6].mxu0 }
 0x38f   : > { %v2520_v57 = vpop.f32.mrb[7].mxu0  ;;  %v955_v58 = vadd.f32 %v953_v54, %v3077_v53 }
 0x391   : > { %v957_v59 = vsel %vm857_vm3, %v955_v58, -inf }
 0x392   : > { %958 = vmax.xlane.f32.xlu1 %v957_v59 }
 0x394   : > { %v947_v60 = vpop.f32.mrb[8].mxu0 }
 0x395   : > { %v954_v61 = vmul.f32 0.35355338, %v947_v60  ;;  %v2525_v62 = vpop.f32.mrb[9].mxu0 }
 0x396   : > { %v950_v63 = vpop.f32.mrb[10].mxu0 }
 0x397   : > { %v2526_v0 = vpop.f32.mrb[11].mxu0  ;;  %v956_v1 = vadd.f32 %v954_v61, %v3077_v53 }
 0x399   : > { %v960_v4 = vsel %vm857_vm3, %v956_v1, -inf }
 0x39a   : > { %961 = vmax.xlane.f32.xlu0 %v960_v4 }
 0x3a3   : > { %1030 = vrot.lane.b32.xlu1 %v3060_v44, %s2830_s16 }
 0x3a7   : > { %1081 = vrot.lane.b32.xlu1 %v3058_v41, %s2831_s15 }
 0x41f   : > { %v959_v5 = vpop.xlane.xlu1 %958 }
 0x420   : > { %v963_v6 = vsub.f32 %v955_v58, %v959_v5 }
 0x422   : > { %v965_v7 = vmul.f32 1.442695, %v963_v6 }
 0x423   : > { %v1031_v8 = vpop.permute.xlu1 %1030 }
 0x424   : > { %2723 = vpow2.f32 %v965_v7  ;;  %v1036_v9 = vsel %vm986_vm5, %v1031_v8, 0 }
 0x425   : > { %2534 = vmatpush3.bf16.msra.mxu0 %v1036_v9 }
 0x426   : > { %2545 = vmatprep.subr.bf16.mxu0 %v2827_v17 }
 0x427   : > { %v962_v10 = vpop.xlane.xlu0 %961  ;;  %v1082_v19 = vpop.permute.xlu1 %1081 }
 0x428   : > { %v964_v11 = vsub.f32 %v956_v1, %v962_v10  ;;  %v1087_v26 = vsel %vm857_vm3, %v1082_v19, 0 }
 0x42a   : > { %v967_v12 = vmul.f32 1.442695, %v964_v11 }
 0x42c   : > { %2725 = vpow2.f32 %v967_v12 }
 0x42e   : > { %v2724_v13 = vpop.eup %2723 }
 0x42f   : > { %v969_v14 = vsel %vm857_vm3, %v2724_v13, 0.0 }
 0x430   : > { %970 = vadd.xlane.f32.xlu0 %v969_v14 }
 0x436   : > { %v2726_v15 = vpop.eup %2725 }
 0x437   : > { %v972_v16 = vsel %vm857_vm3, %v2726_v15, 0.0 }
 0x438   : > { %973 = vadd.xlane.f32.xlu1 %v972_v16 }
 0x446   : > { %981 = vrot.lane.b32.xlu0 %v3058_v41, %s2830_s16  ;;  %s2841_s16 = smov 16  }
 0x449   : > { %1131 = vrot.lane.b32.xlu1 %v3060_v44, %s2831_s15  ;;  %s2842_s15 = smov 24  }
 0x44a   : > { %1079 = vrot.lane.b32.xlu0 %v3058_v41, %s2832_s25 }
 0x44d   : > { %1129 = vrot.lane.b32.xlu1 %v3060_v44, %s2832_s25 }
 0x4bd   : > { %v971_v18 = vpop.xlane.xlu0 %970 }
 0x4be   : > { %2727 = vrcp.f32 %v971_v18 }
 0x4c1   : > { %v982_v20 = vpop.permute.xlu0 %981 }
 0x4c2   : > { %v988_v21 = vsel %vm986_vm5, %v982_v20, 0 }
 0x4c3   : > { %2528 = vmatpush3.bf16.msra.mxu1 %v988_v21 }
 0x4c4   : > { %2539 = vmatprep.subr.bf16.mxu1 %v2827_v17 }
 0x4c5   : > { %v974_v22 = vpop.xlane.xlu1 %973  ;;  %v1080_v31 = vpop.permute.xlu0 %1079 }
 0x4c6   : > { %2729 = vrcp.f32 %v974_v22 }
 0x4c8   : > { %v2728_v23 = vpop.eup %2727 }
 0x4c9   : > { %v977_v24 = vmul.f32 %v2728_v23, %v2724_v13  ;;  %v1132_v29 = vpop.permute.xlu1 %1131 }
 0x4ca   : > { %v1137_v32 = vsel %vm857_vm3, %v1132_v29, 0 }
 0x4cb   : > { %v979_v25 = vpack.c.bf16 %v977_v24, %v977_v24 }
 0x4cd   : > { %2530 = vmatmul.mubr.msk.bf16.vlgmr.msra.gmra.mrb[0].mxu1 %vm857_vm3, %v979_v25  ;;  %v1130_v33 = vpop.permute.xlu1 %1129 }
 0x4ce   : > { %2540 = vmatpush3.bf16.xpose.msra.mxu1 %v1087_v26  ;;  %2541 = vmatprep.mubr.msk.bf16.mxu1 %vm2828_vm2, %v2827_v17 }
 0x4cf   : > { %2551 = vmatprep.subr.bf16.mxu1 %v2827_v17 }
 0x4d0   : > { %v2730_v27 = vpop.eup %2729 }
 0x4d1   : > { %v978_v28 = vmul.f32 %v2730_v27, %v2726_v15 }
 0x4d3   : > { %v980_v30 = vpack.c.bf16 %v978_v28, %v978_v28 }
 0x4d5   : > { %2536 = vmatmul.mubr.msk.bf16.vlgmr.msra.gmra.mrb[12].mxu0 %vm857_vm3, %v980_v30  ;;  %2542 = vmatmul.mubr.msk.bf16.vlgmr.msra.gmra.mrb[4].mxu1 %vm857_vm3, %v1080_v31 }
 0x4d6   : > { %2546 = vmatpush3.bf16.xpose.msra.mxu0 %v1137_v32  ;;  %2547 = vmatprep.mubr.msk.bf16.mxu0 %vm2828_vm2, %v2827_v17 }
 0x4d7   : > { %2557 = vmatprep.subr.bf16.mxu0 %v2827_v17  ;;  %2553 = vmatprep.mubr.msk.bf16.mxu1 %vm2828_vm2, %v2827_v17 }
 0x4dd   : > { %2548 = vmatmul.mubr.msk.bf16.vlgmr.msra.gmra.mrb[16].mxu0 %vm857_vm3, %v1130_v33 }
 0x4de   : > { %2559 = vmatprep.mubr.msk.bf16.mxu0 %vm2828_vm2, %v2827_v17 }
 0x5a0   : > { %v3111_v34 = vpop.f32.mrb[0].mxu1 }
 0x5a1   : > { %v2531_v35 = vpop.f32.mrb[1].mxu1 }
 0x5a2   : > { %v1027_v36 = vpop.f32.mrb[2].mxu1 }
 0x5a3   : > { %v2532_v37 = vpop.f32.mrb[3].mxu1 }
 0x5a8   : > { %v3113_v38 = vpop.f32.mrb[12].mxu0  ;;  %v1123_v39 = vpop.f32.mrb[4].mxu1 }
 0x5a9   : > { %v1078_v40 = vpack.c.bf16 %v3113_v38, %v3111_v34  ;;  %v1179_v42 = vmul.f32 0.35355338, %v1123_v39  ;;  %v2537_v43 = vpop.f32.mrb[13].mxu0  ;;  %v2543_v45 = vpop.f32.mrb[5].mxu1 }
 0x5aa   : > { %v1075_v46 = vpop.f32.mrb[14].mxu0  ;;  %v1126_v47 = vpop.f32.mrb[6].mxu1 }
 0x5ab   : > { %v2538_v48 = vpop.f32.mrb[15].mxu0  ;;  %v2544_v49 = vpop.f32.mrb[7].mxu1  ;;  %v1181_v50 = vadd.f32 %v1179_v42, %v3077_v53 }
 0x5ad   : > { %v1183_v51 = vsel %vm857_vm3, %v1181_v50, -inf }
 0x5ae   : > { %1184 = vmax.xlane.f32.xlu0 %v1183_v51 }
 0x5b0   : > { %v1173_v52 = vpop.f32.mrb[16].mxu0 }
 0x5b1   : > { %v1180_v54 = vmul.f32 0.35355338, %v1173_v52  ;;  %v2549_v55 = vpop.f32.mrb[17].mxu0 }
 0x5b2   : > { %v1176_v56 = vpop.f32.mrb[18].mxu0 }
 0x5b3   : > { %v2550_v57 = vpop.f32.mrb[19].mxu0  ;;  %v1182_v58 = vadd.f32 %v1180_v54, %v3077_v53 }
 0x5b5   : > { %v1186_v59 = vsel %vm857_vm3, %v1182_v58, -inf }
 0x5b6   : > { %1187 = vmax.xlane.f32.xlu1 %v1186_v59 }
 0x5c7   : > { %1255 = vrot.lane.b32.xlu1 %v3060_v44, %s2833_s22 }
 0x5cb   : > { %1306 = vrot.lane.b32.xlu1 %v3058_v41, %s2834_s14 }
 0x5cf   : > { %1356 = vrot.lane.b32.xlu1 %v3060_v44, %s2834_s14 }
 0x5d3   : > { %1354 = vrot.lane.b32.xlu1 %v3060_v44, %s2835_s29 }
 0x63b   : > { %v1185_v60 = vpop.xlane.xlu0 %1184 }
 0x63c   : > { %v1189_v61 = vsub.f32 %v1181_v50, %v1185_v60 }
 0x63e   : > { %v1191_v62 = vmul.f32 1.442695, %v1189_v61 }
 0x640   : > { %2731 = vpow2.f32 %v1191_v62 }
 0x643   : > { %v1188_v63 = vpop.xlane.xlu1 %1187 }
 0x644   : > { %v1190_v0 = vsub.f32 %v1182_v58, %v1188_v63 }
 0x646   : > { %v1193_v1 = vmul.f32 1.442695, %v1190_v0 }
 0x647   : > { %v1256_v4 = vpop.permute.xlu1 %1255 }
 0x648   : > { %2733 = vpow2.f32 %v1193_v1  ;;  %v1261_v5 = vsel %vm986_vm5, %v1256_v4, 0 }
 0x649   : > { %2558 = vmatpush3.bf16.msra.mxu0 %v1261_v5 }
 0x64a   : > { %v2732_v6 = vpop.eup %2731  ;;  %2569 = vmatprep.subr.bf16.mxu0 %v2827_v17 }
 0x64b   : > { %v1195_v7 = vsel %vm857_vm3, %v2732_v6, 0.0  ;;  %v1307_v18 = vpop.permute.xlu1 %1306 }
 0x64c   : > { %1196 = vadd.xlane.f32.xlu0 %v1195_v7  ;;  %v1312_v22 = vsel %vm857_vm3, %v1307_v18, 0 }
 0x64f   : > { %v1357_v21 = vpop.permute.xlu1 %1356 }
 0x650   : > { %v1362_v24 = vsel %vm857_vm3, %v1357_v21, 0 }
 0x652   : > { %v2734_v8 = vpop.eup %2733 }
 0x653   : > { %v1198_v9 = vsel %vm857_vm3, %v2734_v8, 0.0  ;;  %v1355_v26 = vpop.permute.xlu1 %1354 }
 0x654   : > { %1199 = vadd.xlane.f32.xlu0 %v1198_v9 }
 0x66a   : > { %1207 = vrot.lane.b32.xlu0 %v3058_v41, %s2833_s22  ;;  %s3379_s22 = scalar_lea.vmem %s3347_s6, %s2955_s26 }
 0x66e   : > { %1304 = vrot.lane.b32.xlu0 %v3058_v41, %s2835_s29 }
 0x6d9   : > { %v1197_v10 = vpop.xlane.xlu0 %1196 }
 0x6da   : > { %2735 = vrcp.f32 %v1197_v10 }
 0x6e1   : > { %v1200_v11 = vpop.xlane.xlu0 %1199 }
 0x6e2   : > { %2737 = vrcp.f32 %v1200_v11 }
 0x6e4   : > { %v2736_v12 = vpop.eup %2735 }
 0x6e5   : > { %v1203_v13 = vmul.f32 %v2736_v12, %v2732_v6  ;;  %v1208_v14 = vpop.permute.xlu0 %1207 }
 0x6e6   : > { %v1213_v15 = vsel %vm986_vm5, %v1208_v14, 0 }
 0x6e7   : > { %2552 = vmatpush3.bf16.msra.mxu1 %v1213_v15  ;;  %v1205_v16 = vpack.c.bf16 %v1203_v13, %v1203_v13 }
 0x6e8   : > { %2563 = vmatprep.subr.bf16.mxu1 %v2827_v17 }
 0x6e9   : > { %v1305_v25 = vpop.permute.xlu0 %1304 }
 0x6ea   : > { %2554 = vmatmul.mubr.msk.bf16.vlgmr.msra.gmra.mrb[8].mxu1 %vm857_vm3, %v1205_v16 }
 0x6eb   : > { %2565 = vmatprep.mubr.msk.bf16.mxu1 %vm2828_vm2, %v2827_v17 }
 0x6ec   : > { %v2738_v19 = vpop.eup %2737 }
 0x6ed   : > { %v1204_v20 = vmul.f32 %v2738_v19, %v2734_v8 }
 0x6ef   : > { %v1206_v23 = vpack.c.bf16 %v1204_v20, %v1204_v20 }
 0x6f0   : > { %2564 = vmatpush3.bf16.xpose.msra.mxu1 %v1312_v22 }
 0x6f1   : > { %2560 = vmatmul.mubr.msk.bf16.vlgmr.msra.gmra.mrb[20].mxu0 %vm857_vm3, %v1206_v23  ;;  %2575 = vmatprep.subr.bf16.mxu1 %v2827_v17 }
 0x6f2   : > { %2570 = vmatpush3.bf16.xpose.msra.mxu0 %v1362_v24  ;;  %2571 = vmatprep.mubr.msk.bf16.mxu0 %vm2828_vm2, %v2827_v17 }
 0x6f3   : > { %2581 = vmatprep.subr.bf16.mxu0 %v2827_v17 }
 0x6f7   : > { %2566 = vmatmul.mubr.msk.bf16.vlgmr.msra.gmra.mrb[12].mxu1 %vm857_vm3, %v1305_v25 }
 0x6f8   : > { %2577 = vmatprep.mubr.msk.bf16.mxu1 %vm2828_vm2, %v2827_v17 }
 0x6f9   : > { %2572 = vmatmul.mubr.msk.bf16.vlgmr.msra.gmra.mrb[24].mxu0 %vm857_vm3, %v1355_v26 }
 0x6fa   : > { %2583 = vmatprep.mubr.msk.bf16.mxu0 %vm2828_vm2, %v2827_v17 }
 0x7bd   : > { %v3149_v27 = vpop.f32.mrb[8].mxu1 }
 0x7be   : > { %v2555_v28 = vpop.f32.mrb[9].mxu1 }
 0x7bf   : > { %v1252_v29 = vpop.f32.mrb[10].mxu1 }
 0x7c0   : > { %v2556_v30 = vpop.f32.mrb[11].mxu1 }
 0x7c4   : > { %v3151_v31 = vpop.f32.mrb[20].mxu0 }
 0x7c5   : > { %v1303_v32 = vpack.c.bf16 %v3151_v31, %v3149_v27  ;;  %v2561_v33 = vpop.f32.mrb[21].mxu0 }
 0x7c6   : > { %v1300_v35 = vpop.f32.mrb[22].mxu0 }
 0x7c7   : > { %v2562_v36 = vpop.f32.mrb[23].mxu0 }
 0x7ca   : > { %v1348_v37 = vpop.f32.mrb[12].mxu1 }
 0x7cb   : > { %v1404_v39 = vmul.f32 0.35355338, %v1348_v37  ;;  %v2567_v42 = vpop.f32.mrb[13].mxu1 }
 0x7cc   : > { %v1351_v43 = vpop.f32.mrb[14].mxu1  ;;  %v1398_v45 = vpop.f32.mrb[24].mxu0 }
 0x7cd   : > { %v1405_v46 = vmul.f32 0.35355338, %v1398_v45  ;;  %v2568_v47 = vpop.f32.mrb[15].mxu1  ;;  %v2573_v48 = vpop.f32.mrb[25].mxu0  ;;  %v1406_v49 = vadd.f32 %v1404_v39, %v3077_v53 }
 0x7ce   : > { %v1401_v50 = vpop.f32.mrb[26].mxu0 }
 0x7cf   : > { %v2574_v51 = vpop.f32.mrb[27].mxu0  ;;  %v1408_v52 = vsel %vm857_vm3, %v1406_v49, -inf  ;;  %v1407_v54 = vadd.f32 %v1405_v46, %v3077_v53 }
 0x7d0   : > { %1409 = vmax.xlane.f32.xlu0 %v1408_v52 }
 0x7d1   : > { %v1411_v55 = vsel %vm857_vm3, %v1407_v54, -inf }
 0x7d2   : > { %1412 = vmax.xlane.f32.xlu1 %v1411_v55 }
 0x7e3   : > { %1480 = vrot.lane.b32.xlu1 %v3060_v44, %s2836_s17 }
 0x7e7   : > { %1531 = vrot.lane.b32.xlu1 %v3058_v41, %s2837_s0 }
 0x7eb   : > { %1581 = vrot.lane.b32.xlu1 %v3060_v44, %s2837_s0 }
 0x7ef   : > { %1579 = vrot.lane.b32.xlu1 %v3060_v44, %s2838_s20 }
 0x85d   : > { %v1410_v56 = vpop.xlane.xlu0 %1409 }
 0x85e   : > { %v1414_v57 = vsub.f32 %v1406_v49, %v1410_v56 }
 0x85f   : > { %v1413_v58 = vpop.xlane.xlu1 %1412 }
 0x860   : > { %v1416_v59 = vmul.f32 1.442695, %v1414_v57  ;;  %v1415_v60 = vsub.f32 %v1407_v54, %v1413_v58 }
 0x862   : > { %2739 = vpow2.f32 %v1416_v59  ;;  %v1418_v61 = vmul.f32 1.442695, %v1415_v60 }
 0x863   : > { %v1481_v62 = vpop.permute.xlu1 %1480 }
 0x864   : > { %2741 = vpow2.f32 %v1418_v61  ;;  %v1486_v63 = vsel %vm986_vm5, %v1481_v62, 0 }
 0x865   : > { %2582 = vmatpush3.bf16.msra.mxu0 %v1486_v63 }
 0x866   : > { %2593 = vmatprep.subr.bf16.mxu0 %v2827_v17 }
 0x867   : > { %v1532_v11 = vpop.permute.xlu1 %1531 }
 0x868   : > { %v1537_v18 = vsel %vm857_vm3, %v1532_v11, 0 }
 0x86b   : > { %v1582_v16 = vpop.permute.xlu1 %1581 }
 0x86c   : > { %v2740_v0 = vpop.eup %2739  ;;  %v1587_v20 = vsel %vm857_vm3, %v1582_v16, 0 }
 0x86d   : > { %v1420_v1 = vsel %vm857_vm3, %v2740_v0, 0.0 }
 0x86e   : > { %v2742_v4 = vpop.eup %2741  ;;  %1421 = vadd.xlane.f32.xlu0 %v1420_v1 }
 0x86f   : > { %v1423_v5 = vsel %vm857_vm3, %v2742_v4, 0.0  ;;  %v1580_v22 = vpop.permute.xlu1 %1579 }
 0x872   : > { %1424 = vadd.xlane.f32.xlu0 %v1423_v5 }
 0x888   : > { %1432 = vrot.lane.b32.xlu0 %v3058_v41, %s2836_s17 }
 0x88c   : > { %1529 = vrot.lane.b32.xlu0 %v3058_v41, %s2838_s20 }
 0x8fb   : > { %v1422_v6 = vpop.xlane.xlu0 %1421 }
 0x8fc   : > { %2743 = vrcp.f32 %v1422_v6 }
 0x8ff   : > { %v1425_v7 = vpop.xlane.xlu0 %1424 }
 0x900   : > { %2745 = vrcp.f32 %v1425_v7 }
 0x903   : > { %v1433_v8 = vpop.permute.xlu0 %1432 }
 0x904   : > { %v1438_v9 = vsel %vm986_vm5, %v1433_v8, 0 }
 0x905   : > { %2576 = vmatpush3.bf16.msra.mxu1 %v1438_v9  ;;  %v2707_v9 = vld [vmem:[%s2978_s23] sm:$0xff]  }
 0x906   : > { %v2744_v10 = vpop.eup %2743  ;;  %2587 = vmatprep.subr.bf16.mxu1 %v2827_v17 }
 0x907   : > { %v1428_v12 = vmul.f32 %v2744_v10, %v2740_v0  ;;  %v1530_v21 = vpop.permute.xlu0 %1529  ;;  %v2708_v10 = vld [vmem:[%s2978_s23 + $0x8] sm:$0xff]  }
 0x909   : > { %v1430_v13 = vpack.c.bf16 %v1428_v12, %v1428_v12 }
 0x90a   : > { %v2746_v14 = vpop.eup %2745 }
 0x90b   : > { %v1429_v15 = vmul.f32 %v2746_v14, %v2742_v4  ;;  %2578 = vmatmul.mubr.msk.bf16.vlgmr.msra.gmra.mrb[16].mxu1 %vm857_vm3, %v1430_v13 }
 0x90c   : > { %2589 = vmatprep.mubr.msk.bf16.mxu1 %vm2828_vm2, %v2827_v17 }
 0x90d   : > { %v1431_v19 = vpack.c.bf16 %v1429_v15, %v1429_v15 }
 0x90e   : > { %2588 = vmatpush3.bf16.xpose.msra.mxu1 %v1537_v18 }
 0x90f   : > { %2584 = vmatmul.mubr.msk.bf16.vlgmr.msra.gmra.mrb[28].mxu0 %vm857_vm3, %v1431_v19  ;;  %2599 = vmatprep.subr.bf16.mxu1 %v2827_v17 }
 0x910   : > { %2594 = vmatpush3.bf16.xpose.msra.mxu0 %v1587_v20  ;;  %2595 = vmatprep.mubr.msk.bf16.mxu0 %vm2828_vm2, %v2827_v17 }
 0x911   : > { %2605 = vmatprep.subr.bf16.mxu0 %v2827_v17 }
 0x915   : > { %2590 = vmatmul.mubr.msk.bf16.vlgmr.msra.gmra.mrb[20].mxu1 %vm857_vm3, %v1530_v21 }
 0x916   : > { %2601 = vmatprep.mubr.msk.bf16.mxu1 %vm2828_vm2, %v2827_v17 }
 0x917   : > { %2596 = vmatmul.mubr.msk.bf16.vlgmr.msra.gmra.mrb[32].mxu0 %vm857_vm3, %v1580_v22 }
 0x918   : > { %2607 = vmatprep.mubr.msk.bf16.mxu0 %vm2828_vm2, %v2827_v17 }
 0x9de   : > { %v1474_v23 = vpop.f32.mrb[16].mxu1 }
 0x9df   : > { %v2579_v24 = vpop.f32.mrb[17].mxu1 }
 0x9e0   : > { %v1477_v25 = vpop.f32.mrb[18].mxu1 }
 0x9e1   : > { %v2580_v26 = vpop.f32.mrb[19].mxu1 }
 0x9e2   : > { %v1522_v28 = vpop.f32.mrb[28].mxu0 }
 0x9e3   : > { %v1528_v29 = vpack.c.bf16 %v1522_v28, %v1474_v23  ;;  %v2585_v30 = vpop.f32.mrb[29].mxu0 }
 0x9e4   : > { %v1525_v33 = vpop.f32.mrb[30].mxu0 }
 0x9e5   : > { %v2586_v35 = vpop.f32.mrb[31].mxu0 }
 0x9e8   : > { %v1573_v36 = vpop.f32.mrb[20].mxu1 }
 0x9e9   : > { %v1629_v37 = vmul.f32 0.35355338, %v1573_v36  ;;  %v2591_v39 = vpop.f32.mrb[21].mxu1 }
 0x9ea   : > { %v1576_v42 = vpop.f32.mrb[22].mxu1  ;;  %v1623_v43 = vpop.f32.mrb[32].mxu0 }
 0x9eb   : > { %v1630_v45 = vmul.f32 0.35355338, %v1623_v43  ;;  %v2592_v46 = vpop.f32.mrb[23].mxu1  ;;  %v2597_v47 = vpop.f32.mrb[33].mxu0  ;;  %v1631_v48 = vadd.f32 %v1629_v37, %v3077_v53 }
 0x9ec   : > { %v1626_v49 = vpop.f32.mrb[34].mxu0 }
 0x9ed   : > { %v2598_v50 = vpop.f32.mrb[35].mxu0  ;;  %v1633_v51 = vsel %vm857_vm3, %v1631_v48, -inf  ;;  %v1632_v52 = vadd.f32 %v1630_v45, %v3077_v53 }
 0x9ee   : > { %1634 = vmax.xlane.f32.xlu0 %v1633_v51  ;;  %v2709_v51 = vld [vmem:[%s2995_s3] sm:$0xff]  }
 0x9ef   : > { %v1636_v54 = vsel %vm857_vm3, %v1632_v52, -inf }
 0x9f0   : > { %1637 = vmax.xlane.f32.xlu1 %v1636_v54 }
 0xa01   : > { %1705 = vrot.lane.b32.xlu1 %v3060_v44, %s2839_s18 }
 0xa05   : > { %1755 = vrot.lane.b32.xlu1 %v1303_v32, %s2840_s28 }
 0xa09   : > { %1758 = vrot.lane.b32.xlu1 %v1528_v29, %s2841_s16  ;;  %v2422_v29 = vld [vmem:[%s3379_s22] ss:$0 sm:$0xff]  ;;  %s3382_s22 = sld [smem:[#allocation13_spill]] (!%p2440_p6) }
 0xa7b   : > { %v1635_v55 = vpop.xlane.xlu0 %1634 }
 0xa7c   : > { %v1639_v56 = vsub.f32 %v1631_v48, %v1635_v55 }
 0xa7d   : > { %v1638_v57 = vpop.xlane.xlu1 %1637 }
 0xa7e   : > { %v1641_v58 = vmul.f32 1.442695, %v1639_v56  ;;  %v1640_v53 = vsub.f32 %v1632_v52, %v1638_v57  ;;  %v2710_v52 = vld [vmem:[%s2995_s3 + $0x8] sm:$0xff]  }
 0xa80   : > { %2747 = vpow2.f32 %v1641_v58  ;;  %v1643_v59 = vmul.f32 1.442695, %v1640_v53 }
 0xa81   : > { %v1706_v60 = vpop.permute.xlu1 %1705 }
 0xa82   : > { %2749 = vpow2.f32 %v1643_v59  ;;  %v1711_v61 = vsel %vm986_vm5, %v1706_v60, 0 }
 0xa83   : > { %2606 = vmatpush3.bf16.msra.mxu0 %v1711_v61  ;;  %v2423_v61 = vld [vmem:[%s699_s13] ss:$0 sm:$0xff] }
 0xa84   : > { %2619 = vmatprep.subr.bf16.mxu0 %v2827_v17 }
 0xa85   : > { %v1756_v21 = vpop.permute.xlu1 %1755 }
 0xa86   : > { %v1765_v23 = vsel %vm857_vm3, %v1078_v40, %v1756_v21 }
 0xa89   : > { %v1759_v22 = vpop.permute.xlu1 %1758 }
 0xa8a   : > { %v2748_v44 = vpop.eup %2747  ;;  %v1768_v24 = vsel %vm1766_vm6, %v1765_v23, %v1759_v22 }
 0xa8b   : > { %v1645_v27 = vsel %vm857_vm3, %v2748_v44, 0.0 }
 0xa8c   : > { %v2750_v31 = vpop.eup %2749  ;;  %1646 = vadd.xlane.f32.xlu0 %v1645_v27 }
 0xa8d   : > { %v1648_v32 = vsel %vm857_vm3, %v2750_v31, 0.0 }
 0xa90   : > { %1649 = vadd.xlane.f32.xlu0 %v1648_v32  ;;  %v2424_v32 = vld [vmem:[%s702_s24] ss:$0 sm:$0xff] }
 0xaa6   : > { %1657 = vrot.lane.b32.xlu0 %v3058_v41, %s2839_s18 }
 0xb19   : > { %v1647_v62 = vpop.xlane.xlu0 %1646 }
 0xb1a   : > { %2751 = vrcp.f32 %v1647_v62 }
 0xb1d   : > { %v1650_v63 = vpop.xlane.xlu0 %1649 }
 0xb1e   : > { %2753 = vrcp.f32 %v1650_v63 }
 0xb21   : > { %v1658_v0 = vpop.permute.xlu0 %1657 }
 0xb22   : > { %v1663_v1 = vsel %vm986_vm5, %v1658_v0, 0 }
 0xb23   : > { %2600 = vmatpush3.bf16.msra.mxu1 %v1663_v1 }
 0xb24   : > { %v2752_v4 = vpop.eup %2751  ;;  %2611 = vmatprep.subr.bf16.mxu1 %v2827_v17 }
 0xb25   : > { %v1653_v5 = vmul.f32 %v2752_v4, %v2748_v44  ;;  %v2711_v4 = vld [vmem:[%s3005_s30] sm:$0xff]  }
 0xb27   : > { %v1655_v6 = vpack.c.bf16 %v1653_v5, %v1653_v5  ;;  %v2712_v5 = vld [vmem:[%s3005_s30 + $0x8] sm:$0xff]  }
 0xb28   : > { %v2754_v7 = vpop.eup %2753 }
 0xb29   : > { %v1654_v8 = vmul.f32 %v2754_v7, %v2750_v31  ;;  %2602 = vmatmul.mubr.msk.bf16.vlgmr.msra.gmra.mrb[24].mxu1 %vm857_vm3, %v1655_v6  ;;  %v2713_v6 = vld [vmem:[%s3005_s30 + $0x10] sm:$0xff]   ;;  %v2714_v7 = vld [vmem:[%s3005_s30 + $0x18] sm:$0xff]  }
 0xb2a   : > { %2615 = vmatprep.mubr.msk.bf16.mxu1 %vm2828_vm2, %v2827_v17  ;;  %2612 = vmatpush3.bf16.msra.mxu1 %v2707_v9  ;;  %v2717_v9 = vld [vmem:[%s3005_s30 + $0x30] sm:$0xff]  }
 0xb2b   : > { %v1656_v41 = vpack.c.bf16 %v1654_v8, %v1654_v8  ;;  %2613 = vmatprep.subr.bf16.mxu1 %v2827_v17  ;;  %v2715_v8 = vld [vmem:[%s3005_s30 + $0x20] sm:$0xff]  }
 0xb2d   : > { %2608 = vmatmul.mubr.msk.bf16.vlgmr.msra.gmra.mrb[36].mxu0 %vm857_vm3, %v1656_v41  ;;  %v2716_v41 = vld [vmem:[%s3005_s30 + $0x28] sm:$0xff]  }
 0xb2e   : > { %2623 = vmatprep.mubr.msk.bf16.mxu0 %vm2828_vm2, %v2827_v17  ;;  %2614 = vmatpush3.bf16.msra.mxu1 %v2708_v10  ;;  %v2718_v10 = vld [vmem:[%s3005_s30 + $0x38] sm:$0xff]  }
 0xb2f   : > { %2627 = vmatprep.subr.bf16.mxu1 %v2827_v17  ;;  %2620 = vmatpush3.bf16.msra.mxu0 %v2709_v51 }
 0xb30   : > { %2621 = vmatprep.subr.bf16.mxu0 %v2827_v17 }
 0xb33   : > { %2622 = vmatpush3.bf16.msra.mxu0 %v2710_v52 }
 0xbfc   : > { %v1699_v11 = vpop.f32.mrb[24].mxu1 }
 0xbfd   : > { %v2603_v12 = vpop.f32.mrb[25].mxu1 }
 0xbfe   : > { %v1702_v13 = vpop.f32.mrb[26].mxu1 }
 0xbff   : > { %v2604_v14 = vpop.f32.mrb[27].mxu1 }
 0xc00   : > { %v1747_v15 = vpop.f32.mrb[36].mxu0 }
 0xc01   : > { %v1753_v16 = vpack.c.bf16 %v1747_v15, %v1699_v11  ;;  %v2609_v18 = vpop.f32.mrb[37].mxu0  ;;  %v2425_v11 = vld [vmem:[%s710_s5] ss:$0 sm:$0xff] }
 0xc02   : > { %v1750_v19 = vpop.f32.mrb[38].mxu0 }
 0xc03   : > { %1761 = vrot.lane.b32.xlu0 %v1753_v16, %s2842_s15  ;;  %v2610_v20 = vpop.f32.mrb[39].mxu0  ;;  %s3381_s15 = sld [smem:[#allocation12_spill]] (!%p2440_p6) }
 0xc75   : > { %v1762_v25 = vpop.permute.xlu0 %1761 }
 0xc76   : > { %v1771_v26 = vsel %vm1769_vm7, %v1768_v24, %v1762_v25 }
 0xc77   : > { %2616 = vmatmul.mubr.msk.bf16.vlgmr.msra.gmra.mrb[28].mxu1 %vm734_vm1, %v1771_v26 }
 0xc78   : > { %2643 = vmatprep.mubr.msk.bf16.mxu1 %vm2828_vm2, %v2827_v17  ;;  %2628 = vmatpush3.bf16.msra.mxu1 %v2711_v4  ;;  %v2442_v4 = vld [vmem:[%s3382_s22] ss:$0 sm:$0xff] (!%p2440_p6) }
 0xc79   : > { %2629 = vmatprep.subr.bf16.mxu1 %v2827_v17 }
 0xc7c   : > { %2630 = vmatpush3.bf16.msra.mxu1 %v2712_v5 }
 0xc7d   : > { %2631 = vmatprep.subr.bf16.mxu1 %v2827_v17 }
 0xc80   : > { %2632 = vmatpush3.bf16.msra.mxu1 %v2713_v6 }
 0xc81   : > { %2633 = vmatprep.subr.bf16.mxu1 %v2827_v17 }
 0xc84   : > { %2634 = vmatpush3.bf16.msra.mxu1 %v2714_v7 }
 0xc85   : > { %2635 = vmatprep.subr.bf16.mxu1 %v2827_v17 }
 0xc88   : > { %2636 = vmatpush3.bf16.msra.mxu1 %v2715_v8 }
 0xc89   : > { %2637 = vmatprep.subr.bf16.mxu1 %v2827_v17 }
 0xc8c   : > { %2638 = vmatpush3.bf16.msra.mxu1 %v2716_v41 }
 0xc8d   : > { %2639 = vmatprep.subr.bf16.mxu1 %v2827_v17 }
 0xc90   : > { %2640 = vmatpush3.bf16.msra.mxu1 %v2717_v9 }
 0xc91   : > { %2641 = vmatprep.subr.bf16.mxu1 %v2827_v17 }
 0xc94   : > { %2642 = vmatpush3.bf16.msra.mxu1 %v2718_v10 }
 0xd4a   : > { %v1824_v28 = vpop.f32.mrb[28].mxu1 }
 0xd4b   : > { %v1831_v30 = vadd.f32 %v1824_v28, %v3018_v2  ;;  %v2617_v34 = vpop.f32.mrb[29].mxu1 }
 0xd4c   : > { %v1827_v38 = vpop.f32.mrb[30].mxu1 }
 0xd4d   : > { %v3227_v40 = vadd.f32 %v2422_v29, %v1831_v30  ;;  %v1832_v33 = vadd.f32 %v1827_v38, %v3020_v3  ;;  %v2618_v35 = vpop.f32.mrb[31].mxu1  ;;  %v2431_v38 = vld [vmem:[%s718_s19] ss:$0 sm:$0xff]  ;;  %s3380_s19 = sld [smem:[#allocation14_spill]] (!%p2440_p6) }
 0xd4f   : > { %v3230_v36 = vadd.f32 %v2422_v29, %v1832_v33  ;;  %v1844_v37 = vsel %vm734_vm1, %v3227_v40, 0.0 }
 0xd50   : > { %1845 = vadd.xlane.f32.xlu1 %v1844_v37 }
 0xd51   : > { %v1847_v39 = vsel %vm734_vm1, %v3230_v36, 0.0 }
 0xd52   : > { %1848 = vadd.xlane.f32.xlu0 %v1847_v39 }
 0xddd   : > { %v1846_v2 = vpop.xlane.xlu1 %1845 }
 0xdde   : > { %v1850_v42 = vmul.f32 0.03125, %v1846_v2 }
 0xddf   : > { %v1849_v43 = vpop.xlane.xlu0 %1848 }
 0xde0   : > { %v1852_v45 = vsub.f32 %v3227_v40, %v1850_v42  ;;  %v1851_v46 = vmul.f32 0.03125, %v1849_v43 }
 0xde2   : > { %v1853_v3 = vsub.f32 %v3230_v36, %v1851_v46  ;;  %v1854_v47 = vmul.f32 %v1852_v45, %v1852_v45 }
 0xde4   : > { %v1856_v48 = vsel %vm734_vm1, %v1854_v47, 0.0  ;;  %v1855_v49 = vmul.f32 %v1853_v3, %v1853_v3 }
 0xde5   : > { %1857 = vadd.xlane.f32.xlu0 %v1856_v48 }
 0xde6   : > { %v1859_v50 = vsel %vm734_vm1, %v1855_v49, 0.0 }
 0xde9   : > { %1860 = vadd.xlane.f32.xlu0 %v1859_v50 }
 0xe72   : > { %v1858_v54 = vpop.xlane.xlu0 %1857 }
 0xe73   : > { %v1862_v55 = vmul.f32 0.03125, %v1858_v54 }
 0xe75   : > { %v1864_v56 = vadd.f32 1e-05, %v1862_v55 }
 0xe76   : > { %v1861_v57 = vpop.xlane.xlu0 %1860 }
 0xe77   : > { %2755 = vrsqrt.f32 %v1864_v56  ;;  %v1863_v58 = vmul.f32 0.03125, %v1861_v57  ;;  %v2767_v56 = vld [vmem:[%s3380_s19] sm:$0xff] (!%p2440_p6)   ;;  %v2843_v57 = vmov (!%p2440_p6), 0.0  }
 0xe78   : > { %2647 = vmatprep.subr.bf16.mxu0 (!%p2440_p6), %v2843_v57 }
 0xe79   : > { %v1865_v53 = vadd.f32 1e-05, %v1863_v58  ;;  %v2768_v58 = vld [vmem:[%s3380_s19 + $0x8] sm:$0xff] (!%p2440_p6)  }
 0xe7b   : > { %2757 = vrsqrt.f32 %v1865_v53 }
 0xe81   : > { %v2756_v59 = vpop.eup %2755 }
 0xe82   : > { %v1868_v60 = vmul.f32 %v2756_v59, %v1852_v45 }
 0xe84   : > { %v1876_v27 = vmul.f32 %v2423_v61, %v1868_v60 }
 0xe85   : > { %v2758_v44 = vpop.eup %2757 }
 0xe86   : > { %v1869_v31 = vmul.f32 %v2758_v44, %v1853_v3  ;;  %v1884_v63 = vadd.f32 %v2424_v32, %v1876_v27 }
 0xe88   : > { %v1877_v62 = vmul.f32 %v2423_v61, %v1869_v31 }
 0xe8a   : > { %v1885_v0 = vadd.f32 %v2424_v32, %v1877_v62  ;;  %v2441_v62 = vld [vmem:[%s3381_s15] ss:$0 sm:$0xff] (!%p2440_p6) }
 0xe8c   : > { %v1886_v1 = vpack.c.bf16 %v1885_v0, %v1884_v63 }
 0xe8e   : > { %2624 = vmatmul.mubr.msk.bf16.vlgmr.msra.gmra.mrb[40].mxu0 %vm734_vm1, %v1886_v1 }
 0xe8f   : > { %2651 = vmatprep.mubr.msk.bf16.mxu0 (!%p2440_p6), %vm2844_vm8, %v2843_v57  ;;  %2648 = vmatpush3.bf16.msra.mxu0 (!%p2440_p6), %v2767_v56 }
 0xe90   : > { %2649 = vmatprep.subr.bf16.mxu0 (!%p2440_p6), %v2843_v57 }
 0xe93   : > { %2650 = vmatpush3.bf16.msra.mxu0 (!%p2440_p6), %v2768_v58 }
 0xf61   : > { %v1947_v12 = vpop.f32.mrb[40].mxu0 }
 0xf62   : > { %v1948_v13 = vadd.f32 %v2425_v11, %v1947_v12  ;;  %v2625_v14 = vpop.f32.mrb[41].mxu0 }
 0xf63   : > { %v1950_v15 = vpop.f32.mrb[42].mxu0 }
 0xf64   : > { %v2429_v16 = vmul.f32 -1.702, %v1948_v13  ;;  %v1951_v18 = vadd.f32 %v2425_v11, %v1950_v15  ;;  %v2626_v19 = vpop.f32.mrb[43].mxu0 }
 0xf66   : > { %v1958_v20 = vmul.f32 1.442695, %v2429_v16  ;;  %v2430_v21 = vmul.f32 -1.702, %v1951_v18 }
 0xf68   : > { %2759 = vpow2.f32 %v1958_v20  ;;  %v1960_v22 = vmul.f32 1.442695, %v2430_v21 }
 0xf6a   : > { %2761 = vpow2.f32 %v1960_v22 }
 0xf72   : > { %v2760_v17 = vpop.eup %2759 }
 0xf73   : > { %v1962_v23 = vadd.f32 1.0, %v2760_v17 }
 0xf74   : > { %v2762_v24 = vpop.eup %2761 }
 0xf75   : > { %2763 = vrcp.f32 %v1962_v23  ;;  %v1963_v25 = vadd.f32 1.0, %v2762_v24 }
 0xf77   : > { %2765 = vrcp.f32 %v1963_v25 }
 0xf7f   : > { %v2764_v26 = vpop.eup %2763 }
 0xf80   : > { %v1968_v29 = vmul.f32 %v2764_v26, %v1948_v13 }
 0xf81   : > { %v2766_v28 = vpop.eup %2765 }
 0xf82   : > { %v1969_v30 = vmul.f32 %v2766_v28, %v1951_v18 }
 0xf84   : > { %v1970_v34 = vpack.c.bf16 %v1969_v30, %v1968_v29 }
 0xf86   : > { %2644 = vmatmul.mubr.bf16.vlgmr.msra.gmra.mrb[32].mxu1 %v1970_v34 }
0x1059   : > { %v2076_v33 = vpop.f32.mrb[32].mxu1 }
0x105a   : > { %v2077_v35 = vadd.f32 %v2431_v38, %v2076_v33  ;;  %v2645_v37 = vpop.f32.mrb[33].mxu1  ;;  %2090 = sbr.rel (%p2440_p6) target bundleno = 4724 (0x1274), region = 92 }
0x105b   : > { %v2079_v39 = vpop.f32.mrb[34].mxu1 }
0x105c   : > { %v2083_v2 = vadd.f32 %v2077_v35, %v3227_v40  ;;  %v2080_v42 = vadd.f32 %v2431_v38, %v2079_v39  ;;  %v2646_v43 = vpop.f32.mrb[35].mxu1 }
0x105e   : > { %2085 = vst.msk [vmem:[#allocation2] sm:$0xff] %vm734_vm1, %v2083_v2  ;;  %v2084_v45 = vadd.f32 %v2080_v42, %v3230_v36  ;;  %v2093_v46 = vsel (!%p2440_p6), %vm734_vm1, %v2083_v2, 0.0 }
0x105f   : > { %2094 = vadd.xlane.f32.xlu0 (!%p2440_p6), %v2093_v46 }
0x1060   : > { %2086 = vst.msk [vmem:[#allocation2 + $0x8] sm:$0xff] %vm734_vm1, %v2084_v45  ;;  %v2096_v3 = vsel (!%p2440_p6), %vm734_vm1, %v2084_v45, 0.0 }
0x1063   : > { %2097 = vadd.xlane.f32.xlu0 %v2096_v3 }
0x10ec   : > { %v2095_v47 = vpop.xlane.xlu0 %2094 }
0x10ed   : > { %v2099_v48 = vmul.f32 0.03125, %v2095_v47 }
0x10ef   : > { %v2101_v40 = vsub.f32 %v2083_v2, %v2099_v48 }
0x10f0   : > { %v2098_v49 = vpop.xlane.xlu0 %2097 }
0x10f1   : > { %v2100_v50 = vmul.f32 0.03125, %v2098_v49  ;;  %v2103_v51 = vmul.f32 %v2101_v40, %v2101_v40 }
0x10f3   : > { %v2102_v52 = vsub.f32 %v2084_v45, %v2100_v50  ;;  %v2105_v36 = vsel %vm734_vm1, %v2103_v51, 0.0 }
0x10f4   : > { %2106 = vadd.xlane.f32.xlu1 %v2105_v36 }
0x10f5   : > { %v2104_v54 = vmul.f32 %v2102_v52, %v2102_v52 }
0x10f7   : > { %v2108_v55 = vsel %vm734_vm1, %v2104_v54, 0.0 }
0x10f8   : > { %2109 = vadd.xlane.f32.xlu1 %v2108_v55 }
0x1181   : > { %v2107_v53 = vpop.xlane.xlu1 %2106 }
0x1182   : > { %v2111_v59 = vmul.f32 0.03125, %v2107_v53 }
0x1184   : > { %v2113_v60 = vadd.f32 1e-05, %v2111_v59 }
0x1185   : > { %v2110_v61 = vpop.xlane.xlu1 %2109 }
0x1186   : > { %2769 = vrsqrt.f32 %v2113_v60  ;;  %v2112_v44 = vmul.f32 0.03125, %v2110_v61 }
0x1188   : > { %v2114_v27 = vadd.f32 1e-05, %v2112_v44 }
0x118a   : > { %2771 = vrsqrt.f32 %v2114_v27 }
0x1190   : > { %v2770_v31 = vpop.eup %2769 }
0x1191   : > { %v2117_v32 = vmul.f32 %v2770_v31, %v2101_v40 }
0x1193   : > { %v2125_v1 = vmul.f32 %v2441_v62, %v2117_v32 }
0x1194   : > { %v2772_v63 = vpop.eup %2771 }
0x1195   : > { %v2118_v0 = vmul.f32 %v2772_v63, %v2102_v52  ;;  %v2133_v6 = vadd.f32 %v2442_v4, %v2125_v1 }
0x1197   : > { %v2126_v5 = vmul.f32 %v2441_v62, %v2118_v0 }
0x1199   : > { %v2134_v7 = vadd.f32 %v2442_v4, %v2126_v5 }
0x119b   : > { %v2135_v8 = vpack.c.bf16 %v2134_v7, %v2133_v6 }
0x119d   : > { %2652 = vmatmul.mubr.msk.bf16.vlgmr.msra.gmra.mrb[0].mxu0 %vm734_vm1, %v2135_v8 }
0x1270   : > { %v2189_v41 = vpop.f32.mrb[0].mxu0 }
0x1271   : > { %2196 = vst.msk [vmem:[#allocation3] sm:$0xff] %vm1766_vm6, %v2189_v41  ;;  %v2653_v9 = vpop.f32.mrb[1].mxu0 }
0x1272   : > { %v2192_v10 = vpop.f32.mrb[2].mxu0 }
0x1273   : > { %2197 = vst.msk [vmem:[#allocation3 + $0x8] sm:$0xff] %vm1766_vm6, %v2192_v10  ;;  %v2654_v11 = vpop.f32.mrb[3].mxu0 }
0x1274 PF: > { %s3383_s14 = sld [smem:[#allocation7_spill]]  ;;  %s2845_s17 = smov [#allocation3]  }
0x1275   : > { %s2207_s13 = sshll.u32 %s2845_s17, 4  ;;  %s2208_s13 = int_to_ptr.vmem [resolvable:$true] %s2207_s13 }
0x1276   : > { %s2773_s24 = scalar_lea.vmem %s2208_s13, 256  ;;  %p2780_p11 = scmp.lt.s32.totalorder %s2208_s13, %s2208_s13 }
0x1277   : > { %p2774_p8 = scmp.ne.s32.totalorder %s2208_s13, %s2773_s24  ;;  %p2781_p12 = scmp.lt.s32.totalorder %s2773_s24, %s2773_s24 }
0x1279   : > { %p2782_p13 = por %p2781_p12, %p2780_p11 }
0x127a   : > { %s3384_s29 = sadd.s32 4294967295, %s3383_s14  }
0x127b   : > { %p3305_p7 = scmp.eq.s32.totalorder %s3384_s29, 1 }
0x127d   : > { %p2775_p9 = pnand %p2774_p8, %p3305_p7 }
0x127f   : > { %p2776_p10 = pneg %p2775_p9 }
0x1281   : > { %p2783_p0 = pnand %p2782_p13, %p2776_p10 }
0x1283   : > { %2786 = shalt.err (!%p2783_p0)
}
0x1284   : > { %s3386_s21 = sld [smem:[#allocation15_spill]] }
0x128a   : > { %s3387_s26 = smov %s3386_s21  ;;  %s2787_s0 = scalar_lea.hbm %s3386_s21, 256 }
0x128b   : > { %p2788_p1 = scmp.ne.s32.totalorder %s3387_s26, %s2787_s0  ;;  %p2793_p4 = scmp.lt.u32.totalorder %s2787_s0, %s3387_s26 }
0x128d   : > { %p2789_p2 = pnand %p2788_p1, %p3305_p7 }
0x128f   : > { %p2790_p3 = pneg %p2789_p2 }
0x1291   : > { %p2795_p5 = pnand %p2793_p4, %p2790_p3 }
0x1293   : > { %2798 = shalt.err (!%p2795_p5)
}
0x1294   : > { %s2846_s23 = smov 128  }
0x1295   : > { %2656 = dma.vmem_to_hbm [thread:$0]  (%p3305_p7), %s2208_s13, 256, %s3387_s26, [#allocation4], %s2846_s23, %s2846_s23, %s2840_s28  }
0x1296   : > { %2812 = dma.done.wait (%p3305_p7), [#allocation4], 256  }
0x1297   : > { %2814 = vsyncadd (%p3305_p7), [#allocation4], 4294967040 }
0x1298 PF: > { %s3388_s14 = sld [smem:[#allocation7_spill]]  ;;  %s3389_s21 = sld [smem:[#allocation6_spill]] }
0x1299   : > { %s3390_s22 = sld [smem:[#allocation8_spill]] }
0x129e   : > { %s27_s23 = sadd.s32 1, %s3388_s14  }
0x129f   : > { %p24_p6 = scmp.ge.s32.totalorder %s27_s23, 4  }
0x12a1   :  { %26 = sbr.rel (!%p24_p6) target bundleno = 10 (0xa), region = 156 }
0x12a8   :  { %2223 = vsyncpa [#allocation4], 1 }
0x12a9   :  { %2225 = vsyncpa [#allocation4 + $0x1], 1 }

</bundles_post_ra>
